<compile_context>
chip_gen: v5e
topology: v5e:2x2
jax: 0.10.0
libtpu: 0.0.40
codegen_flags: <defaults>
</compile_context>

<pallas_src>
import functools

import jax
import jax.numpy as jnp
from jax.experimental import pallas as pl
from jax.experimental.pallas import tpu as pltpu

HIDDEN = 512
N_CLASSES = 10
PAD_OUT = 128  # lane-dense padded width of the final layer


def _round_up(x, m):
    return ((x + m - 1) // m) * m


def _mlp_kernel(h_ref, w1_ref, b1_ref, w2_ref, b2_ref, w3_ref, b3_ref, out_ref):
    # h_ref: (TB, 512) f32 activation tile; cast to bf16 in-kernel (cheap VPU filler
    # under the MXU) instead of a separate wrapper-side cast pass over HBM.
    x = h_ref[...].astype(jnp.bfloat16)

    y1 = jnp.dot(x, w1_ref[...], preferred_element_type=jnp.float32) + b1_ref[...]
    y1 = jnp.maximum(y1, 0.0).astype(jnp.bfloat16)

    y2 = jnp.dot(y1, w2_ref[...], preferred_element_type=jnp.float32) + b2_ref[...]
    y2 = jnp.maximum(y2, 0.0).astype(jnp.bfloat16)

    y3 = jnp.dot(y2, w3_ref[...], preferred_element_type=jnp.float32) + b3_ref[...]
    out_ref[...] = y3.astype(out_ref.dtype)  # bf16 writeback, padded to 128 lanes


def _pick_batch_tile(batch, tb_max):
    """Static (trace-time) batch-tile selection.

    * multiple of 16 (bf16 output sublane packing; also covers f32 input's multiple of 8)
    * tiny batches get one right-sized tile instead of padding to 128
    * large batches are capped so the grid has >= 2 steps (v7x megacore sharding)
    """
    b16 = _round_up(batch, 16)
    tb_max = max(16, _round_up(tb_max, 16))
    if b16 <= 128:
        return min(b16, tb_max)
    half = _round_up((b16 + 1) // 2, 16)
    return min(tb_max, max(128, half))


@functools.partial(jax.jit, static_argnames=("tb",))
def label_predictor(h, params, *, tb=1024):
    """h: (B, 512) float32. Returns logits (B, 10) float32."""
    w1, b1, w2, b2, w3, b3 = params  # w*: bf16 (in, out); biases f32; layer 3 padded to 128 cols
    B = h.shape[0]

    tb_eff = _pick_batch_tile(B, tb)
    b_pad = _round_up(B, tb_eff)
    if b_pad != B:
        h = jnp.pad(h, ((0, b_pad - B), (0, 0)))

    # Constant index_map -> same block every step -> weights stay VMEM-resident.
    resident = lambda a: pl.BlockSpec(a.shape, lambda i: (0,) * a.ndim)

    out = pl.pallas_call(
        _mlp_kernel,
        out_shape=jax.ShapeDtypeStruct((b_pad, PAD_OUT), jnp.bfloat16),
        grid=(b_pad // tb_eff,),
        in_specs=[
            pl.BlockSpec((tb_eff, HIDDEN), lambda i: (i, 0)),  # f32 activation tile
            resident(w1), resident(b1),
            resident(w2), resident(b2),
            resident(w3), resident(b3),
        ],
        out_specs=pl.BlockSpec((tb_eff, PAD_OUT), lambda i: (i, 0)),
        compiler_params=pltpu.CompilerParams(
            dimension_semantics=("parallel",),
        ),
    )(h, w1, b1, w2, b2, w3, b3)

    return out[:B, :N_CLASSES].astype(jnp.float32)


def init_params(key):
    """Deterministic init matching PyTorch nn.Linear default (uniform +/- 1/sqrt(fan_in)).

    Weights stored (in, out) in bf16; biases kept in f32 (bias add happens in f32).
    The last layer is zero-padded from 10 to 128 output columns for lane-dense stores.
    """
    def linear(key, fan_in, fan_out):
        kw, kb = jax.random.split(key)
        bound = 1.0 / jnp.sqrt(fan_in)
        w = jax.random.uniform(kw, (fan_in, fan_out), jnp.float32, -bound, bound)
        b = jax.random.uniform(kb, (1, fan_out), jnp.float32, -bound, bound)
        return w, b

    k1, k2, k3 = jax.random.split(key, 3)
    w1, b1 = linear(k1, HIDDEN, HIDDEN)
    w2, b2 = linear(k2, HIDDEN, HIDDEN)
    w3, b3 = linear(k3, HIDDEN, N_CLASSES)

    # Zero-pad the final layer to a lane-dense width (kept at 128, not 256).
    w3p = jnp.zeros((HIDDEN, PAD_OUT), jnp.float32).at[:, :N_CLASSES].set(w3)
    b3p = jnp.zeros((1, PAD_OUT), jnp.float32).at[:, :N_CLASSES].set(b3)

    return (
        w1.astype(jnp.bfloat16), b1,
        w2.astype(jnp.bfloat16), b2,
        w3p.astype(jnp.bfloat16), b3p,
    )


def _reference(h, params):
    """Pure-JAX reference replicating the kernel's bf16-matmul / f32-accumulate math
    (including the bf16 logit writeback)."""
    w1, b1, w2, b2, w3, b3 = params
    f32 = lambda a: a.astype(jnp.float32)
    x = h.astype(jnp.bfloat16).astype(jnp.float32)
    y = jnp.maximum(x @ f32(w1) + b1, 0.0).astype(jnp.bfloat16).astype(jnp.float32)
    y = jnp.maximum(y @ f32(w2) + b2, 0.0).astype(jnp.bfloat16).astype(jnp.float32)
    y = (y @ f32(w3) + b3).astype(jnp.bfloat16).astype(jnp.float32)
    return y[:, :N_CLASSES]


if __name__ == "__main__":
    key = jax.random.PRNGKey(0)
    k_param, k_small, k_large = jax.random.split(key, 3)

    params = init_params(k_param)

    # Small batch (tiny-tile path: one 16-row tile, grid of 1).
    h_small = jax.random.normal(k_small, (8, HIDDEN), jnp.float32)
    out_small = jax.block_until_ready(label_predictor(h_small, params))
    ref_small = _reference(h_small, params)
    assert out_small.shape == (8, N_CLASSES), out_small.shape
    assert jnp.allclose(out_small, ref_small, atol=3e-2, rtol=3e-2), \
        float(jnp.max(jnp.abs(out_small - ref_small)))

    # Larger, non-aligned batch (multi-step grid + batch-padding path).
    h_large = jax.random.normal(k_large, (300, HIDDEN), jnp.float32)
    out_large = jax.block_until_ready(label_predictor(h_large, params))
    ref_large = _reference(h_large, params)
    assert out_large.shape == (300, N_CLASSES), out_large.shape
    assert jnp.allclose(out_large, ref_large, atol=3e-2, rtol=3e-2), \
        float(jnp.max(jnp.abs(out_large - ref_large)))

    print("KERNEL_OK")
</pallas_src>

<mosaic_0001>
module attributes {stable_mosaic.version = 11 : i64} {
  func.func @_mlp_kernel(%arg0: i32, %arg1: memref<16x512xf32, #tpu.memory_space<vmem>>, %arg2: memref<512x512xbf16, #tpu.memory_space<vmem>>, %arg3: memref<1x512xf32, #tpu.memory_space<vmem>>, %arg4: memref<512x512xbf16, #tpu.memory_space<vmem>>, %arg5: memref<1x512xf32, #tpu.memory_space<vmem>>, %arg6: memref<512x128xbf16, #tpu.memory_space<vmem>>, %arg7: memref<1x128xf32, #tpu.memory_space<vmem>>, %arg8: memref<16x128xbf16, #tpu.memory_space<vmem>>) attributes {dimension_semantics = [#tpu.dimension_semantics<parallel>], iteration_bounds = array<i64: 1>, scalar_prefetch = 0 : i64, scratch_operands = 0 : i64, tpu.core_type = #tpu.core_type<tc>, window_params = [{transform_indices = @transform_0, window_bounds = array<i64: 16, 512>}, {pipeline_mode = #tpu.pipeline_mode<synchronous>, transform_indices = @transform_1, window_bounds = array<i64: 512, 512>}, {pipeline_mode = #tpu.pipeline_mode<synchronous>, transform_indices = @transform_2, window_bounds = array<i64: 1, 512>}, {pipeline_mode = #tpu.pipeline_mode<synchronous>, transform_indices = @transform_3, window_bounds = array<i64: 512, 512>}, {pipeline_mode = #tpu.pipeline_mode<synchronous>, transform_indices = @transform_4, window_bounds = array<i64: 1, 512>}, {pipeline_mode = #tpu.pipeline_mode<synchronous>, transform_indices = @transform_5, window_bounds = array<i64: 512, 128>}, {pipeline_mode = #tpu.pipeline_mode<synchronous>, transform_indices = @transform_6, window_bounds = array<i64: 1, 128>}, {transform_indices = @transform_7, window_bounds = array<i64: 16, 128>}]} {
    %c0 = arith.constant 0 : index
    %c0_0 = arith.constant 0 : index
    %0 = vector.load %arg1[%c0, %c0_0] : memref<16x512xf32, #tpu.memory_space<vmem>>, vector<16x512xf32>
    %1 = arith.truncf %0 : vector<16x512xf32> to vector<16x512xbf16>
    %c0_1 = arith.constant 0 : index
    %c0_2 = arith.constant 0 : index
    %2 = vector.load %arg2[%c0_1, %c0_2] : memref<512x512xbf16, #tpu.memory_space<vmem>>, vector<512x512xbf16>
    %cst = arith.constant dense<0.000000e+00> : vector<16x512xf32>
    %3 = tpu.matmul %1, %2, %cst {dimension_numbers = #tpu.dot_dimension_numbers<[1], [0], [0], [1], [0, 0, 1, 1], [], []>} : vector<16x512xbf16>, vector<512x512xbf16>, vector<16x512xf32> -> vector<16x512xf32>
    %c0_3 = arith.constant 0 : index
    %c0_4 = arith.constant 0 : index
    %4 = vector.load %arg3[%c0_3, %c0_4] : memref<1x512xf32, #tpu.memory_space<vmem>>, vector<1x512xf32>
    %5 = vector.broadcast %4 : vector<1x512xf32> to vector<16x512xf32>
    %6 = arith.addf %3, %5 : vector<16x512xf32>
    %cst_5 = arith.constant 0.000000e+00 : f32
    %7 = vector.broadcast %cst_5 : f32 to vector<16x512xf32>
    %8 = arith.maximumf %6, %7 : vector<16x512xf32>
    %9 = arith.truncf %8 : vector<16x512xf32> to vector<16x512xbf16>
    %c0_6 = arith.constant 0 : index
    %c0_7 = arith.constant 0 : index
    %10 = vector.load %arg4[%c0_6, %c0_7] : memref<512x512xbf16, #tpu.memory_space<vmem>>, vector<512x512xbf16>
    %cst_8 = arith.constant dense<0.000000e+00> : vector<16x512xf32>
    %11 = tpu.matmul %9, %10, %cst_8 {dimension_numbers = #tpu.dot_dimension_numbers<[1], [0], [0], [1], [0, 0, 1, 1], [], []>} : vector<16x512xbf16>, vector<512x512xbf16>, vector<16x512xf32> -> vector<16x512xf32>
    %c0_9 = arith.constant 0 : index
    %c0_10 = arith.constant 0 : index
    %12 = vector.load %arg5[%c0_9, %c0_10] : memref<1x512xf32, #tpu.memory_space<vmem>>, vector<1x512xf32>
    %13 = vector.broadcast %12 : vector<1x512xf32> to vector<16x512xf32>
    %14 = arith.addf %11, %13 : vector<16x512xf32>
    %cst_11 = arith.constant 0.000000e+00 : f32
    %15 = vector.broadcast %cst_11 : f32 to vector<16x512xf32>
    %16 = arith.maximumf %14, %15 : vector<16x512xf32>
    %17 = arith.truncf %16 : vector<16x512xf32> to vector<16x512xbf16>
    %c0_12 = arith.constant 0 : index
    %c0_13 = arith.constant 0 : index
    %18 = vector.load %arg6[%c0_12, %c0_13] : memref<512x128xbf16, #tpu.memory_space<vmem>>, vector<512x128xbf16>
    %cst_14 = arith.constant dense<0.000000e+00> : vector<16x128xf32>
    %19 = tpu.matmul %17, %18, %cst_14 {dimension_numbers = #tpu.dot_dimension_numbers<[1], [0], [0], [1], [0, 0, 1, 1], [], []>} : vector<16x512xbf16>, vector<512x128xbf16>, vector<16x128xf32> -> vector<16x128xf32>
    %c0_15 = arith.constant 0 : index
    %c0_16 = arith.constant 0 : index
    %20 = vector.load %arg7[%c0_15, %c0_16] : memref<1x128xf32, #tpu.memory_space<vmem>>, vector<1x128xf32>
    %21 = vector.broadcast %20 : vector<1x128xf32> to vector<16x128xf32>
    %22 = arith.addf %19, %21 : vector<16x128xf32>
    %23 = arith.truncf %22 : vector<16x128xf32> to vector<16x128xbf16>
    %c0_17 = arith.constant 0 : index
    %c0_18 = arith.constant 0 : index
    %24 = vector.load %arg8[%c0_17, %c0_18] : memref<16x128xbf16, #tpu.memory_space<vmem>>, vector<16x128xbf16>
    tpu.vector_store %arg8[%c0_17, %c0_18], %23 {strides = array<i32>} : memref<16x128xbf16, #tpu.memory_space<vmem>>, vector<16x128xbf16>,
    return
  }
  func.func @transform_0(%arg0: i32) -> (i32, i32) {
    %c0_i32 = arith.constant 0 : i32
    %c0_i32_0 = arith.constant 0 : i32
    return %arg0, %c0_i32 : i32, i32
  }
  func.func @transform_1(%arg0: i32) -> (i32, i32) {
    %c0_i32 = arith.constant 0 : i32
    %c0_i32_0 = arith.constant 0 : i32
    %c0_i32_1 = arith.constant 0 : i32
    return %c0_i32, %c0_i32_0 : i32, i32
  }
  func.func @transform_2(%arg0: i32) -> (i32, i32) {
    %c0_i32 = arith.constant 0 : i32
    %c0_i32_0 = arith.constant 0 : i32
    %c0_i32_1 = arith.constant 0 : i32
    return %c0_i32, %c0_i32_0 : i32, i32
  }
  func.func @transform_3(%arg0: i32) -> (i32, i32) {
    %c0_i32 = arith.constant 0 : i32
    %c0_i32_0 = arith.constant 0 : i32
    %c0_i32_1 = arith.constant 0 : i32
    return %c0_i32, %c0_i32_0 : i32, i32
  }
  func.func @transform_4(%arg0: i32) -> (i32, i32) {
    %c0_i32 = arith.constant 0 : i32
    %c0_i32_0 = arith.constant 0 : i32
    %c0_i32_1 = arith.constant 0 : i32
    return %c0_i32, %c0_i32_0 : i32, i32
  }
  func.func @transform_5(%arg0: i32) -> (i32, i32) {
    %c0_i32 = arith.constant 0 : i32
    %c0_i32_0 = arith.constant 0 : i32
    %c0_i32_1 = arith.constant 0 : i32
    return %c0_i32, %c0_i32_0 : i32, i32
  }
  func.func @transform_6(%arg0: i32) -> (i32, i32) {
    %c0_i32 = arith.constant 0 : i32
    %c0_i32_0 = arith.constant 0 : i32
    %c0_i32_1 = arith.constant 0 : i32
    return %c0_i32, %c0_i32_0 : i32, i32
  }
  func.func @transform_7(%arg0: i32) -> (i32, i32) {
    %c0_i32 = arith.constant 0 : i32
    %c0_i32_0 = arith.constant 0 : i32
    return %arg0, %c0_i32 : i32, i32
  }
}

</mosaic_0001>

<bundles_post_ra>
// kernel: label_predictor.1
= control target key start
LH: loop header
LB: loop body
LE: loop exit
PB: predicated region body
PF: predicated region fallthrough
CT: control target
= control target key end

     0   :  { %12 = vsyncpa [#allocation3], 0  ;;  %s4120_s0 = inlined_call_operand.vmem [shape: f32[16,512], index: 0, kind: input, shape index: {}]   ;;  %s4121_s1 = inlined_call_operand.hbm [shape: bf16[512,512], index: 1, kind: input, shape index: {}]   ;;  %s4122_s2 = inlined_call_operand.vmem [shape: f32[1,512], index: 2, kind: input, shape index: {}]   ;;  %s4123_s3 = inlined_call_operand.hbm [shape: bf16[512,512], index: 3, kind: input, shape index: {}]   ;;  %s4124_s4 = inlined_call_operand.vmem [shape: f32[1,512], index: 4, kind: input, shape index: {}]   ;;  %s4125_s5 = inlined_call_operand.hbm [shape: bf16[512,128], index: 5, kind: input, shape index: {}]   ;;  %s4126_s6 = inlined_call_operand.vmem [shape: f32[1,128], index: 6, kind: input, shape index: {}]   ;;  %s4127_s7 = inlined_call_operand.vmem [shape: bf16[16,128], index: 7, kind: output, shape index: {}]  }
   0x1   :  { %13 = vsyncpa [#allocation5], 0  ;;  %s35_s26 = sshll.u32 %s4123_s3, 4  ;;  %s3968_s27 = smov [#allocation4]   ;;  %s36_s26 = int_to_ptr.hbm [resolvable:$true] %s35_s26 }
   0x2   :  { %s37_s28 = sshll.u32 %s3968_s27, 4  ;;  %s20_s8 = sshll.u32 %s4121_s1, 4  ;;  %s38_s28 = int_to_ptr.vmem [resolvable:$true] %s37_s28  ;;  %s21_s8 = int_to_ptr.hbm [resolvable:$true] %s20_s8 }
   0x3   :  { %s3969_s9 = smov 256   ;;  %s3970_s10 = smov 16  }
   0x4   :  { %43 = dma.hbm_to_vmem [thread:$0]  %s36_s26, 16384, %s38_s28, [#allocation5], %s3969_s9, %s3969_s9, %s3970_s10  }
   0x5   :  { %s3971_s11 = smov [#allocation2]   ;;  %s50_s15 = sshll.u32 %s4125_s5, 4  ;;  %s51_s15 = int_to_ptr.hbm [resolvable:$true] %s50_s15 }
   0x6   :  { %s22_s12 = sshll.u32 %s3971_s11, 4  ;;  %s3972_s3 = smov [#allocation6]   ;;  %s23_s12 = int_to_ptr.vmem [resolvable:$true] %s22_s12 }
   0x7   :  { %28 = dma.hbm_to_vmem [thread:$0]  %s21_s8, 16384, %s23_s12, [#allocation3], %s3969_s9, %s3969_s9, %s3970_s10  }
   0x8   :  { %s52_s16 = sshll.u32 %s3972_s3, 4  ;;  %s3973_s17 = smov 64   ;;  %s53_s16 = int_to_ptr.vmem [resolvable:$true] %s52_s16 }
   0x9   :  { %s3974_s18 = smov 4  }
   0xa   :  { %58 = dma.hbm_to_vmem [thread:$0]  %s51_s15, 4096, %s53_s16, [#allocation5], %s3973_s17, %s3973_s17, %s3974_s18  }
   0xb   :  { %3964 = dma.done.wait [#allocation3], 16384  }
   0xc   :  { %3965 = vsyncadd [#allocation3], 4294950912 }
   0xd   :  { %3966 = dma.done.wait [#allocation5], 20480  }
   0xe   :  { %3967 = vsyncadd [#allocation5], 4294946816  ;;  %v2553_v0 = vld [vmem:[#allocation2 + $0xe0] sm:$0xf]  ;;  %v3621_v1 = vld [vmem:[#allocation2 + $0xec] sm:$0xf0] }
   0xf   :  { %v2681_v2 = vld [vmem:[#allocation2 + $0x1e0] sm:$0xf]  ;;  %v2554_v3 = vor.u32 %v3621_v1, %v2553_v0  ;;  %v3653_v4 = vld [vmem:[#allocation2 + $0x1ec] sm:$0xf0] }
  0x10   :  { %v2809_v5 = vld [vmem:[#allocation2 + $0x2e0] sm:$0xf]  ;;  %v3685_v6 = vld [vmem:[#allocation2 + $0x2ec] sm:$0xf0]  ;;  %v2682_v7 = vor.u32 %v3653_v4, %v2681_v2 }
  0x11   :  { %v2810_v8 = vor.u32 %v3685_v6, %v2809_v5  ;;  %v2937_v9 = vld [vmem:[#allocation2 + $0x3e0] sm:$0xf]  ;;  %v3717_v10 = vld [vmem:[#allocation2 + $0x3ec] sm:$0xf0]  ;;  %863 = vmatpush.bf16.msra.mxu0 %v2554_v3 }
  0x12   :  { %v2537_v11 = vld [vmem:[#allocation2 + $0xc0] sm:$0xf]  ;;  %v2938_v12 = vor.u32 %v3717_v10, %v2937_v9  ;;  %v3617_v13 = vld [vmem:[#allocation2 + $0xcc] sm:$0xf0]  ;;  %877 = vmatpush.bf16.msra.mxu1 %v2682_v7 }
  0x13   :  { %v2665_v14 = vld [vmem:[#allocation2 + $0x1c0] sm:$0xf]  ;;  %v3649_v15 = vld [vmem:[#allocation2 + $0x1cc] sm:$0xf0]  ;;  %891 = vmatpush.bf16.msra.mxu2 %v2810_v8  ;;  %v2538_v16 = vor.u32 %v3617_v13, %v2537_v11 }
  0x14   :  { %v2666_v17 = vor.u32 %v3649_v15, %v2665_v14  ;;  %v2793_v18 = vld [vmem:[#allocation2 + $0x2c0] sm:$0xf]  ;;  %v3681_v19 = vld [vmem:[#allocation2 + $0x2cc] sm:$0xf0]  ;;  %905 = vmatpush.bf16.msra.mxu3 %v2938_v12 }
  0x15   :  { %v2921_v20 = vld [vmem:[#allocation2 + $0x3c0] sm:$0xf]  ;;  %v2794_v21 = vor.u32 %v3681_v19, %v2793_v18  ;;  %v3713_v22 = vld [vmem:[#allocation2 + $0x3cc] sm:$0xf0]  ;;  %864 = vmatpush.bf16.msra.mxu0 %v2538_v16 }
  0x16   :  { %v2521_v23 = vld [vmem:[#allocation2 + $0xa0] sm:$0xf]  ;;  %v3613_v24 = vld [vmem:[#allocation2 + $0xac] sm:$0xf0]  ;;  %v2922_v25 = vor.u32 %v3713_v22, %v2921_v20  ;;  %878 = vmatpush.bf16.msra.mxu1 %v2666_v17 }
  0x17   :  { %v2649_v26 = vld [vmem:[#allocation2 + $0x1a0] sm:$0xf]  ;;  %v3645_v27 = vld [vmem:[#allocation2 + $0x1ac] sm:$0xf0]  ;;  %v2522_v29 = vor.u32 %v3613_v24, %v2521_v23  ;;  %892 = vmatpush.bf16.msra.mxu2 %v2794_v21 }
  0x18   :  { %v2777_v28 = vld [vmem:[#allocation2 + $0x2a0] sm:$0xf]  ;;  %v3677_v30 = vld [vmem:[#allocation2 + $0x2ac] sm:$0xf0]  ;;  %v2650_v33 = vor.u32 %v3645_v27, %v2649_v26  ;;  %906 = vmatpush.bf16.msra.mxu3 %v2922_v25  ;;  %v3619_v27 = vld [vmem:[#allocation2 + $0xe4] sm:$0xf] }
  0x19   :  { %v2905_v31 = vld [vmem:[#allocation2 + $0x3a0] sm:$0xf]  ;;  %v3709_v32 = vld [vmem:[#allocation2 + $0x3ac] sm:$0xf0]  ;;  %v2778_v34 = vor.u32 %v3677_v30, %v2777_v28  ;;  %865 = vmatpush.bf16.msra.mxu0 %v2522_v29  ;;  %v2555_v29 = vld [vmem:[#allocation2 + $0xf0] sm:$0xf0] }
  0x1a   :  { %v2505_v35 = vld [vmem:[#allocation2 + $0x80] sm:$0xf]  ;;  %v3609_v36 = vld [vmem:[#allocation2 + $0x8c] sm:$0xf0]  ;;  %v2906_v38 = vor.u32 %v3709_v32, %v2905_v31  ;;  %879 = vmatpush.bf16.msra.mxu1 %v2650_v33  ;;  %v3651_v30 = vld [vmem:[#allocation2 + $0x1e4] sm:$0xf] }
  0x1b   :  { %v2633_v37 = vld [vmem:[#allocation2 + $0x180] sm:$0xf]  ;;  %v3641_v39 = vld [vmem:[#allocation2 + $0x18c] sm:$0xf0]  ;;  %v2506_v44 = vor.u32 %v3609_v36, %v2505_v35  ;;  %893 = vmatpush.bf16.msra.mxu2 %v2778_v34  ;;  %v2683_v31 = vld [vmem:[#allocation2 + $0x1f0] sm:$0xf0] }
  0x1c   :  { %v2761_v40 = vld [vmem:[#allocation2 + $0x280] sm:$0xf]  ;;  %v3673_v41 = vld [vmem:[#allocation2 + $0x28c] sm:$0xf0]  ;;  %v2634_v45 = vor.u32 %v3641_v39, %v2633_v37  ;;  %907 = vmatpush.bf16.msra.mxu3 %v2906_v38  ;;  %v3683_v32 = vld [vmem:[#allocation2 + $0x2e4] sm:$0xf] }
  0x1d   :  { %v2889_v42 = vld [vmem:[#allocation2 + $0x380] sm:$0xf]  ;;  %v3705_v43 = vld [vmem:[#allocation2 + $0x38c] sm:$0xf0]  ;;  %v2762_v46 = vor.u32 %v3673_v41, %v2761_v40  ;;  %866 = vmatpush.bf16.msra.mxu0 %v2506_v44  ;;  %v2811_v33 = vld [vmem:[#allocation2 + $0x2f0] sm:$0xf0] }
  0x1e   :  { %v2489_v47 = vld [vmem:[#allocation2 + $0x60] sm:$0xf]  ;;  %v3605_v48 = vld [vmem:[#allocation2 + $0x6c] sm:$0xf0]  ;;  %v2890_v50 = vor.u32 %v3705_v43, %v2889_v42  ;;  %880 = vmatpush.bf16.msra.mxu1 %v2634_v45  ;;  %v3715_v34 = vld [vmem:[#allocation2 + $0x3e4] sm:$0xf]  ;;  %v2558_v45 = vor.u32 %v3619_v27, %v2555_v29 }
  0x1f   :  { %v2617_v49 = vld [vmem:[#allocation2 + $0x160] sm:$0xf]  ;;  %v3637_v51 = vld [vmem:[#allocation2 + $0x16c] sm:$0xf0]  ;;  %v2490_v56 = vor.u32 %v3605_v48, %v2489_v47  ;;  %894 = vmatpush.bf16.msra.mxu2 %v2762_v46  ;;  %v2939_v36 = vld [vmem:[#allocation2 + $0x3f0] sm:$0xf0] }
  0x20   :  { %v2745_v52 = vld [vmem:[#allocation2 + $0x260] sm:$0xf]  ;;  %v3669_v53 = vld [vmem:[#allocation2 + $0x26c] sm:$0xf0]  ;;  %v2618_v57 = vor.u32 %v3637_v51, %v2617_v49  ;;  %908 = vmatpush.bf16.msra.mxu3 %v2890_v50  ;;  %v76_v43 = vld [vmem:[%s4120_s0 + $0x18] sm:$0xff]  ;;  %v2686_v49 = vor.u32 %v3651_v30, %v2683_v31  ;;  %v2814_v50 = vor.u32 %v3683_v32, %v2811_v33 }
  0x21   :  { %v2873_v54 = vld [vmem:[#allocation2 + $0x360] sm:$0xf]  ;;  %v3701_v55 = vld [vmem:[#allocation2 + $0x36c] sm:$0xf0]  ;;  %v2746_v58 = vor.u32 %v3669_v53, %v2745_v52  ;;  %867 = vmatpush.bf16.msra.mxu0 %v2490_v56  ;;  %v80_v46 = vld [vmem:[%s4120_s0 + $0x38] sm:$0xff] }
  0x22   :  { %v2473_v59 = vld [vmem:[#allocation2 + $0x40] sm:$0xf]  ;;  %v3601_v60 = vld [vmem:[#allocation2 + $0x4c] sm:$0xf0]  ;;  %v2874_v62 = vor.u32 %v3701_v55, %v2873_v54  ;;  %881 = vmatpush.bf16.msra.mxu1 %v2618_v57  ;;  %v3615_v47 = vld [vmem:[#allocation2 + $0xc4] sm:$0xf]  ;;  %v2942_v54 = vor.u32 %v3715_v34, %v2939_v36 }
  0x23   :  { %v2601_v61 = vld [vmem:[#allocation2 + $0x140] sm:$0xf]  ;;  %v3633_v63 = vld [vmem:[#allocation2 + $0x14c] sm:$0xf0]  ;;  %v2474_v4 = vor.u32 %v3601_v60, %v2473_v59  ;;  %895 = vmatpush.bf16.msra.mxu2 %v2746_v58  ;;  %v2539_v48 = vld [vmem:[#allocation2 + $0xd0] sm:$0xf0]  ;;  %v4052_v60 = vpack.c.bf16 %v80_v46, %v76_v43 }
  0x24   :  { %v2729_v0 = vld [vmem:[#allocation2 + $0x240] sm:$0xf]  ;;  %v3665_v1 = vld [vmem:[#allocation2 + $0x24c] sm:$0xf0]  ;;  %v2602_v6 = vor.u32 %v3633_v63, %v2601_v61  ;;  %909 = vmatpush.bf16.msra.mxu3 %v2874_v62  ;;  %v3647_v51 = vld [vmem:[#allocation2 + $0x1c4] sm:$0xf]  ;;  %v2542_v63 = vor.u32 %v3615_v47, %v2539_v48 }
  0x25   :  { %v2857_v2 = vld [vmem:[#allocation2 + $0x340] sm:$0xf]  ;;  %v3697_v3 = vld [vmem:[#allocation2 + $0x34c] sm:$0xf0]  ;;  %v2730_v7 = vor.u32 %v3665_v1, %v2729_v0  ;;  %868 = vmatpush.bf16.msra.mxu0 %v2474_v4  ;;  %v74_v52 = vld [vmem:[%s4120_s0 + $0x8] sm:$0xff] }
  0x26   :  { %v2457_v5 = vld [vmem:[#allocation2 + $0x20] sm:$0xf]  ;;  %v3597_v8 = vld [vmem:[#allocation2 + $0x2c] sm:$0xf0]  ;;  %v2858_v11 = vor.u32 %v3697_v3, %v2857_v2  ;;  %882 = vmatpush.bf16.msra.mxu1 %v2602_v6  ;;  %v78_v53 = vld [vmem:[%s4120_s0 + $0x28] sm:$0xff] }
  0x27   :  { %v2585_v9 = vld [vmem:[#allocation2 + $0x120] sm:$0xf]  ;;  %v3629_v10 = vld [vmem:[#allocation2 + $0x12c] sm:$0xf0]  ;;  %v2458_v18 = vor.u32 %v3597_v8, %v2457_v5  ;;  %896 = vmatpush.bf16.msra.mxu2 %v2730_v7  ;;  %v2667_v56 = vld [vmem:[#allocation2 + $0x1d0] sm:$0xf0]  ;;  %v4054_v0 = vpack.c.bf16 %v78_v53, %v74_v52 }
  0x28   :  { %v2713_v12 = vld [vmem:[#allocation2 + $0x220] sm:$0xf]  ;;  %v3661_v13 = vld [vmem:[#allocation2 + $0x22c] sm:$0xf0]  ;;  %v2586_v23 = vor.u32 %v3629_v10, %v2585_v9  ;;  %910 = vmatpush.bf16.msra.mxu3 %v2858_v11  ;;  %v3679_v57 = vld [vmem:[#allocation2 + $0x2c4] sm:$0xf]  ;;  %v2670_v1 = vor.u32 %v3647_v51, %v2667_v56 }
  0x29   :  { %v2841_v14 = vld [vmem:[#allocation2 + $0x320] sm:$0xf]  ;;  %v3693_v15 = vld [vmem:[#allocation2 + $0x32c] sm:$0xf0]  ;;  %v2714_v24 = vor.u32 %v3661_v13, %v2713_v12  ;;  %869 = vmatpush.bf16.msra.mxu0 %v2458_v18  ;;  %v2795_v58 = vld [vmem:[#allocation2 + $0x2d0] sm:$0xf0] }
  0x2a   :  { %v2441_v16 = vld [vmem:[#allocation2] sm:$0xf]  ;;  %v3593_v17 = vld [vmem:[#allocation2 + $0xc] sm:$0xf0]  ;;  %v2842_v28 = vor.u32 %v3693_v15, %v2841_v14  ;;  %883 = vmatpush.bf16.msra.mxu1 %v2586_v23  ;;  %v3711_v61 = vld [vmem:[#allocation2 + $0x3c4] sm:$0xf]  ;;  %v2798_v2 = vor.u32 %v3679_v57, %v2795_v58 }
  0x2b   :  { %v2569_v19 = vld [vmem:[#allocation2 + $0x100] sm:$0xf]  ;;  %v3625_v20 = vld [vmem:[#allocation2 + $0x10c] sm:$0xf0]  ;;  %v2442_v35 = vor.u32 %v3593_v17, %v2441_v16  ;;  %897 = vmatpush.bf16.msra.mxu2 %v2714_v24  ;;  %v2923_v62 = vld [vmem:[#allocation2 + $0x3d0] sm:$0xf0] }
  0x2c   :  { %v2697_v21 = vld [vmem:[#allocation2 + $0x200] sm:$0xf]  ;;  %v3657_v22 = vld [vmem:[#allocation2 + $0x20c] sm:$0xf0]  ;;  %v2570_v39 = vor.u32 %v3625_v20, %v2569_v19  ;;  %911 = vmatpush.bf16.msra.mxu3 %v2842_v28  ;;  %v3611_v3 = vld [vmem:[#allocation2 + $0xa4] sm:$0xf]  ;;  %v2926_v6 = vor.u32 %v3711_v61, %v2923_v62 }
  0x2d   :  { %v2825_v25 = vld [vmem:[#allocation2 + $0x300] sm:$0xf]  ;;  %v3689_v26 = vld [vmem:[#allocation2 + $0x30c] sm:$0xf0]  ;;  %v2698_v40 = vor.u32 %v3657_v22, %v2697_v21  ;;  %870 = vmatpush.bf16.msra.mxu0 %v2442_v35  ;;  %v2523_v4 = vld [vmem:[#allocation2 + $0xb0] sm:$0xf0] }
  0x2e   :  { %v75_v37 = vld [vmem:[%s4120_s0 + $0x10] sm:$0xff]  ;;  %v73_v41 = vld [vmem:[%s4120_s0] sm:$0xff]  ;;  %v2826_v44 = vor.u32 %v3689_v26, %v2825_v25  ;;  %884 = vmatpush.bf16.msra.mxu1 %v2570_v39  ;;  %v2526_v12 = vor.u32 %v3611_v3, %v2523_v4 }
  0x2f   :  { %v79_v38 = vld [vmem:[%s4120_s0 + $0x30] sm:$0xff]  ;;  %v77_v42 = vld [vmem:[%s4120_s0 + $0x20] sm:$0xff]  ;;  %898 = vmatpush.bf16.msra.mxu2 %v2698_v40 }
  0x30   :  { %v4048_v55 = vpack.c.bf16 %v79_v38, %v75_v37  ;;  %v4050_v59 = vpack.c.bf16 %v77_v42, %v73_v41  ;;  %912 = vmatpush.bf16.msra.mxu3 %v2826_v44  ;;  %v3643_v5 = vld [vmem:[#allocation2 + $0x1a4] sm:$0xf]  ;;  %v2651_v7 = vld [vmem:[#allocation2 + $0x1b0] sm:$0xf0] }
  0x31   :  { %919 = vmatpush.bf16.msrb.mxu0 %v2558_v45  ;;  %v3675_v8 = vld [vmem:[#allocation2 + $0x2a4] sm:$0xf]  ;;  %v2779_v9 = vld [vmem:[#allocation2 + $0x2b0] sm:$0xf0]  ;;  %885 = vmatmul.bf16.vlgmr.msra.gmra.mxu1 %v4054_v0  ;;  %v2654_v13 = vor.u32 %v3643_v5, %v2651_v7 }
  0x32   :  { %933 = vmatpush.bf16.msrb.mxu1 %v2686_v49  ;;  %899 = vmatmul.bf16.vlgmr.msra.gmra.mxu2 %v4048_v55  ;;  %v3707_v10 = vld [vmem:[#allocation2 + $0x3a4] sm:$0xf]  ;;  %v2907_v11 = vld [vmem:[#allocation2 + $0x3b0] sm:$0xf0]  ;;  %v2782_v14 = vor.u32 %v3675_v8, %v2779_v9 }
  0x33   :  { %947 = vmatpush.bf16.msrb.mxu2 %v2814_v50  ;;  %871 = vmatmul.bf16.vlgmr.msra.gmra.mxu0 %v4050_v59  ;;  %v3607_v15 = vld [vmem:[#allocation2 + $0x84] sm:$0xf]  ;;  %v2507_v16 = vld [vmem:[#allocation2 + $0x90] sm:$0xf0]  ;;  %v2910_v18 = vor.u32 %v3707_v10, %v2907_v11 }
  0x34   :  { %961 = vmatpush.bf16.msrb.mxu3 %v2942_v54  ;;  %v3639_v17 = vld [vmem:[#allocation2 + $0x184] sm:$0xf]  ;;  %v2635_v19 = vld [vmem:[#allocation2 + $0x190] sm:$0xf0]  ;;  %v2510_v24 = vor.u32 %v3607_v15, %v2507_v16  ;;  %v3654_v16 = vld [vmem:[#allocation2 + $0x1f4] sm:$0xf0] }
  0x35   :  { %913 = vmatmul.bf16.vlgmr.msra.gmra.mxu3 %v4052_v60  ;;  %920 = vmatpush.bf16.msrb.mxu0 %v2542_v63  ;;  %v3671_v20 = vld [vmem:[#allocation2 + $0x284] sm:$0xf]  ;;  %v2763_v21 = vld [vmem:[#allocation2 + $0x290] sm:$0xf0]  ;;  %v2638_v25 = vor.u32 %v3639_v17, %v2635_v19  ;;  %v2817_v17 = vld [vmem:[#allocation2 + $0x2e8] sm:$0xf] }
  0x36   :  { %934 = vmatpush.bf16.msrb.mxu1 %v2670_v1  ;;  %v3703_v22 = vld [vmem:[#allocation2 + $0x384] sm:$0xf]  ;;  %v2891_v23 = vld [vmem:[#allocation2 + $0x390] sm:$0xf0]  ;;  %v2766_v26 = vor.u32 %v3671_v20, %v2763_v21  ;;  %v2945_v21 = vld [vmem:[#allocation2 + $0x3e8] sm:$0xf] }
  0x37   :  { %948 = vmatpush.bf16.msrb.mxu2 %v2798_v2  ;;  %v3603_v27 = vld [vmem:[#allocation2 + $0x64] sm:$0xf]  ;;  %v2491_v28 = vld [vmem:[#allocation2 + $0x70] sm:$0xf0]  ;;  %v2894_v30 = vor.u32 %v3703_v22, %v2891_v23  ;;  %v3718_v22 = vld [vmem:[#allocation2 + $0x3f4] sm:$0xf0] }
  0x38   :  { %962 = vmatpush.bf16.msrb.mxu3 %v2926_v6  ;;  %v3635_v29 = vld [vmem:[#allocation2 + $0x164] sm:$0xf]  ;;  %v2619_v31 = vld [vmem:[#allocation2 + $0x170] sm:$0xf0]  ;;  %v2494_v36 = vor.u32 %v3603_v27, %v2491_v28  ;;  %v2545_v27 = vld [vmem:[#allocation2 + $0xc8] sm:$0xf] }
  0x39   :  { %921 = vmatpush.bf16.msrb.mxu0 %v2526_v12  ;;  %v3667_v32 = vld [vmem:[#allocation2 + $0x264] sm:$0xf]  ;;  %v2747_v33 = vld [vmem:[#allocation2 + $0x270] sm:$0xf0]  ;;  %v2622_v37 = vor.u32 %v3635_v29, %v2619_v31  ;;  %v2561_v12 = vld [vmem:[#allocation2 + $0xe8] sm:$0xf] }
  0x3a   :  { %935 = vmatpush.bf16.msrb.mxu1 %v2654_v13  ;;  %v3699_v34 = vld [vmem:[#allocation2 + $0x364] sm:$0xf]  ;;  %v2875_v35 = vld [vmem:[#allocation2 + $0x370] sm:$0xf0]  ;;  %v2750_v38 = vor.u32 %v3667_v32, %v2747_v33  ;;  %v3622_v13 = vld [vmem:[#allocation2 + $0xf4] sm:$0xf0] }
  0x3b   :  { %949 = vmatpush.bf16.msrb.mxu2 %v2782_v14  ;;  %v3599_v39 = vld [vmem:[#allocation2 + $0x44] sm:$0xf]  ;;  %v2475_v40 = vld [vmem:[#allocation2 + $0x50] sm:$0xf0]  ;;  %v2878_v42 = vor.u32 %v3699_v34, %v2875_v35  ;;  %v2689_v14 = vld [vmem:[#allocation2 + $0x1e8] sm:$0xf] }
  0x3c   :  { %963 = vmatpush.bf16.msrb.mxu3 %v2910_v18  ;;  %v3631_v41 = vld [vmem:[#allocation2 + $0x144] sm:$0xf]  ;;  %v2603_v43 = vld [vmem:[#allocation2 + $0x150] sm:$0xf0]  ;;  %v2478_v48 = vor.u32 %v3599_v39, %v2475_v40  ;;  %v3686_v18 = vld [vmem:[#allocation2 + $0x2f4] sm:$0xf0] }
  0x3d   :  { %922 = vmatpush.bf16.msrb.mxu0 %v2510_v24  ;;  %v3663_v44 = vld [vmem:[#allocation2 + $0x244] sm:$0xf]  ;;  %v2731_v45 = vld [vmem:[#allocation2 + $0x250] sm:$0xf0]  ;;  %v2606_v49 = vor.u32 %v3631_v41, %v2603_v43  ;;  %v2562_v24 = vor.u32 %v3622_v13, %v2561_v12  ;;  %v3618_v28 = vld [vmem:[#allocation2 + $0xd4] sm:$0xf0] }
  0x3e   :  { %936 = vmatpush.bf16.msrb.mxu1 %v2638_v25  ;;  %v3695_v46 = vld [vmem:[#allocation2 + $0x344] sm:$0xf]  ;;  %v2859_v47 = vld [vmem:[#allocation2 + $0x350] sm:$0xf0]  ;;  %v2734_v50 = vor.u32 %v3663_v44, %v2731_v45  ;;  %v2690_v25 = vor.u32 %v3654_v16, %v2689_v14  ;;  %v2673_v29 = vld [vmem:[#allocation2 + $0x1c8] sm:$0xf] }
  0x3f   :  { %950 = vmatpush.bf16.msrb.mxu2 %v2766_v26  ;;  %v3595_v51 = vld [vmem:[#allocation2 + $0x24] sm:$0xf]  ;;  %v2459_v52 = vld [vmem:[#allocation2 + $0x30] sm:$0xf0]  ;;  %v2862_v54 = vor.u32 %v3695_v46, %v2859_v47  ;;  %v2818_v26 = vor.u32 %v3686_v18, %v2817_v17  ;;  %v3650_v31 = vld [vmem:[#allocation2 + $0x1d4] sm:$0xf0] }
  0x40   :  { %964 = vmatpush.bf16.msrb.mxu3 %v2894_v30  ;;  %v3627_v53 = vld [vmem:[#allocation2 + $0x124] sm:$0xf]  ;;  %v2587_v56 = vld [vmem:[#allocation2 + $0x130] sm:$0xf0]  ;;  %v2462_v63 = vor.u32 %v3595_v51, %v2459_v52  ;;  %v2946_v30 = vor.u32 %v3718_v22, %v2945_v21  ;;  %v2801_v32 = vld [vmem:[#allocation2 + $0x2c8] sm:$0xf] }
  0x41   :  { %923 = vmatpush.bf16.msrb.mxu0 %v2494_v36  ;;  %v3659_v57 = vld [vmem:[#allocation2 + $0x224] sm:$0xf]  ;;  %v2715_v58 = vld [vmem:[#allocation2 + $0x230] sm:$0xf0]  ;;  %v2590_v3 = vor.u32 %v3627_v53, %v2587_v56  ;;  %v3682_v33 = vld [vmem:[#allocation2 + $0x2d4] sm:$0xf0]  ;;  %v2546_v36 = vor.u32 %v3618_v28, %v2545_v27 }
  0x42   :  { %937 = vmatpush.bf16.msrb.mxu1 %v2622_v37  ;;  %v3691_v61 = vld [vmem:[#allocation2 + $0x324] sm:$0xf]  ;;  %v2843_v62 = vld [vmem:[#allocation2 + $0x330] sm:$0xf0]  ;;  %v2718_v4 = vor.u32 %v3659_v57, %v2715_v58  ;;  %v2929_v34 = vld [vmem:[#allocation2 + $0x3c8] sm:$0xf]  ;;  %v2674_v37 = vor.u32 %v3650_v31, %v2673_v29 }
  0x43   :  { %951 = vmatpush.bf16.msrb.mxu2 %v2750_v38  ;;  %v3591_v1 = vld [vmem:[#allocation2 + $0x4] sm:$0xf]  ;;  %v2443_v2 = vld [vmem:[#allocation2 + $0x10] sm:$0xf0]  ;;  %v2846_v8 = vor.u32 %v3691_v61, %v2843_v62  ;;  %v3714_v35 = vld [vmem:[#allocation2 + $0x3d4] sm:$0xf0]  ;;  %v2802_v38 = vor.u32 %v3682_v33, %v2801_v32 }
  0x44   :  { %965 = vmatpush.bf16.msrb.mxu3 %v2878_v42  ;;  %v3623_v5 = vld [vmem:[#allocation2 + $0x104] sm:$0xf]  ;;  %v2571_v6 = vld [vmem:[#allocation2 + $0x110] sm:$0xf0]  ;;  %v2446_v15 = vor.u32 %v3591_v1, %v2443_v2  ;;  %v2529_v39 = vld [vmem:[#allocation2 + $0xa8] sm:$0xf]  ;;  %v2930_v42 = vor.u32 %v3714_v35, %v2929_v34 }
  0x45   :  { %924 = vmatpush.bf16.msrb.mxu0 %v2478_v48  ;;  %v3655_v7 = vld [vmem:[#allocation2 + $0x204] sm:$0xf]  ;;  %v2699_v9 = vld [vmem:[#allocation2 + $0x210] sm:$0xf0]  ;;  %v2574_v19 = vor.u32 %v3623_v5, %v2571_v6  ;;  %v3614_v40 = vld [vmem:[#allocation2 + $0xb4] sm:$0xf0] }
  0x46   :  { %938 = vmatpush.bf16.msrb.mxu1 %v2606_v49  ;;  %v3687_v10 = vld [vmem:[#allocation2 + $0x304] sm:$0xf]  ;;  %v2827_v11 = vld [vmem:[#allocation2 + $0x310] sm:$0xf0]  ;;  %v2702_v20 = vor.u32 %v3655_v7, %v2699_v9  ;;  %v2657_v41 = vld [vmem:[#allocation2 + $0x1a8] sm:$0xf]  ;;  %v2530_v48 = vor.u32 %v3614_v40, %v2529_v39 }
  0x47   :  { %952 = vmatpush.bf16.msrb.mxu2 %v2734_v50  ;;  %v2830_v23 = vor.u32 %v3687_v10, %v2827_v11  ;;  %v3646_v43 = vld [vmem:[#allocation2 + $0x1b4] sm:$0xf0]  ;;  %v2785_v44 = vld [vmem:[#allocation2 + $0x2a8] sm:$0xf] }
  0x48   :  { %966 = vmatpush.bf16.msrb.mxu3 %v2862_v54  ;;  %v3678_v45 = vld [vmem:[#allocation2 + $0x2b4] sm:$0xf0]  ;;  %v2913_v46 = vld [vmem:[#allocation2 + $0x3a8] sm:$0xf]  ;;  %v2658_v49 = vor.u32 %v3646_v43, %v2657_v41 }
  0x49   :  { %925 = vmatpush.bf16.msrb.mxu0 %v2462_v63  ;;  %v3710_v47 = vld [vmem:[#allocation2 + $0x3b4] sm:$0xf0]  ;;  %v2786_v50 = vor.u32 %v3678_v45, %v2785_v44  ;;  %v2513_v51 = vld [vmem:[#allocation2 + $0x88] sm:$0xf] }
  0x4a   :  { %939 = vmatpush.bf16.msrb.mxu1 %v2590_v3  ;;  %v3610_v52 = vld [vmem:[#allocation2 + $0x94] sm:$0xf0]  ;;  %v2641_v53 = vld [vmem:[#allocation2 + $0x188] sm:$0xf]  ;;  %v2914_v54 = vor.u32 %v3710_v47, %v2913_v46 }
  0x4b   :  { %953 = vmatpush.bf16.msrb.mxu2 %v2718_v4  ;;  %v3642_v56 = vld [vmem:[#allocation2 + $0x194] sm:$0xf0]  ;;  %v2769_v57 = vld [vmem:[#allocation2 + $0x288] sm:$0xf]  ;;  %v2514_v63 = vor.u32 %v3610_v52, %v2513_v51  ;;  %v2691_v52 = vld [vmem:[#allocation2 + $0x1f8] sm:$0xf0] }
  0x4c   :  { %967 = vmatpush.bf16.msrb.mxu3 %v2846_v8  ;;  %v3674_v58 = vld [vmem:[#allocation2 + $0x294] sm:$0xf0]  ;;  %v2897_v61 = vld [vmem:[#allocation2 + $0x388] sm:$0xf]  ;;  %v2642_v1 = vor.u32 %v3642_v56, %v2641_v53  ;;  %v3684_v53 = vld [vmem:[#allocation2 + $0x2ec] sm:$0xf] }
  0x4d   :  { %926 = vmatpush.bf16.msrb.mxu0 %v2446_v15  ;;  %v3706_v62 = vld [vmem:[#allocation2 + $0x394] sm:$0xf0]  ;;  %v2770_v2 = vor.u32 %v3674_v58, %v2769_v57  ;;  %v2497_v3 = vld [vmem:[#allocation2 + $0x68] sm:$0xf]  ;;  %v3716_v58 = vld [vmem:[#allocation2 + $0x3ec] sm:$0xf] }
  0x4e   :  { %940 = vmatpush.bf16.msrb.mxu1 %v2574_v19  ;;  %v3606_v4 = vld [vmem:[#allocation2 + $0x74] sm:$0xf0]  ;;  %v2625_v5 = vld [vmem:[#allocation2 + $0x168] sm:$0xf]  ;;  %v2898_v6 = vor.u32 %v3706_v62, %v2897_v61  ;;  %v2947_v61 = vld [vmem:[#allocation2 + $0x3f8] sm:$0xf0] }
  0x4f   :  { %954 = vmatpush.bf16.msrb.mxu2 %v2702_v20  ;;  %v3638_v7 = vld [vmem:[#allocation2 + $0x174] sm:$0xf0]  ;;  %v2753_v8 = vld [vmem:[#allocation2 + $0x268] sm:$0xf]  ;;  %v2498_v12 = vor.u32 %v3606_v4, %v2497_v3  ;;  %v3616_v3 = vld [vmem:[#allocation2 + $0xcc] sm:$0xf] }
  0x50   :  { %968 = vmatpush.bf16.msrb.mxu3 %v2830_v23  ;;  %927 = vmatmul.bf16.vlgmr.msrb.gmra.mxu0 %v4050_v59  ;;  %v3670_v9 = vld [vmem:[#allocation2 + $0x274] sm:$0xf0]  ;;  %v2881_v10 = vld [vmem:[#allocation2 + $0x368] sm:$0xf]  ;;  %v2626_v13 = vor.u32 %v3638_v7, %v2625_v5  ;;  %v2547_v4 = vld [vmem:[#allocation2 + $0xd8] sm:$0xf0] }
  0x51   :  { %975 = vmatpush.bf16.msra.mxu0 %v2562_v24  ;;  %941 = vmatmul.bf16.vlgmr.msrb.gmra.mxu1 %v4054_v0  ;;  %v3702_v11 = vld [vmem:[#allocation2 + $0x374] sm:$0xf0]  ;;  %v2754_v14 = vor.u32 %v3670_v9, %v2753_v8  ;;  %v2481_v15 = vld [vmem:[#allocation2 + $0x48] sm:$0xf]  ;;  %v3648_v5 = vld [vmem:[#allocation2 + $0x1cc] sm:$0xf] }
  0x52   :  { %989 = vmatpush.bf16.msra.mxu1 %v2690_v25  ;;  %955 = vmatmul.bf16.vlgmr.msrb.gmra.mxu2 %v4048_v55  ;;  %v3602_v16 = vld [vmem:[#allocation2 + $0x54] sm:$0xf0]  ;;  %v2609_v17 = vld [vmem:[#allocation2 + $0x148] sm:$0xf]  ;;  %v2882_v18 = vor.u32 %v3702_v11, %v2881_v10  ;;  %v2675_v7 = vld [vmem:[#allocation2 + $0x1d8] sm:$0xf0] }
  0x53   :  { %1003 = vmatpush.bf16.msra.mxu2 %v2818_v26  ;;  %969 = vmatmul.bf16.vlgmr.msrb.gmra.mxu3 %v4052_v60  ;;  %v3634_v19 = vld [vmem:[#allocation2 + $0x154] sm:$0xf0]  ;;  %v2737_v20 = vld [vmem:[#allocation2 + $0x248] sm:$0xf]  ;;  %v2482_v24 = vor.u32 %v3602_v16, %v2481_v15  ;;  %v3680_v8 = vld [vmem:[#allocation2 + $0x2cc] sm:$0xf] }
  0x54   :  { %1017 = vmatpush.bf16.msra.mxu3 %v2946_v30  ;;  %v3666_v21 = vld [vmem:[#allocation2 + $0x254] sm:$0xf0]  ;;  %v2865_v22 = vld [vmem:[#allocation2 + $0x348] sm:$0xf]  ;;  %v2610_v25 = vor.u32 %v3634_v19, %v2609_v17  ;;  %v2803_v9 = vld [vmem:[#allocation2 + $0x2d8] sm:$0xf0] }
  0x55   :  { %976 = vmatpush.bf16.msra.mxu0 %v2546_v36  ;;  %v3698_v23 = vld [vmem:[#allocation2 + $0x354] sm:$0xf0]  ;;  %v2738_v26 = vor.u32 %v3666_v21, %v2737_v20  ;;  %v2465_v27 = vld [vmem:[#allocation2 + $0x28] sm:$0xf]  ;;  %v3712_v10 = vld [vmem:[#allocation2 + $0x3cc] sm:$0xf] }
  0x56   :  { %990 = vmatpush.bf16.msra.mxu1 %v2674_v37  ;;  %v3598_v28 = vld [vmem:[#allocation2 + $0x34] sm:$0xf0]  ;;  %v2593_v29 = vld [vmem:[#allocation2 + $0x128] sm:$0xf]  ;;  %v2866_v30 = vor.u32 %v3698_v23, %v2865_v22  ;;  %v2931_v11 = vld [vmem:[#allocation2 + $0x3d8] sm:$0xf0] }
  0x57   :  { %1004 = vmatpush.bf16.msra.mxu2 %v2802_v38  ;;  %v3630_v31 = vld [vmem:[#allocation2 + $0x134] sm:$0xf0]  ;;  %v2721_v32 = vld [vmem:[#allocation2 + $0x228] sm:$0xf]  ;;  %v2466_v36 = vor.u32 %v3598_v28, %v2465_v27  ;;  %v3612_v15 = vld [vmem:[#allocation2 + $0xac] sm:$0xf] }
  0x58   :  { %1018 = vmatpush.bf16.msra.mxu3 %v2930_v42  ;;  %v3662_v33 = vld [vmem:[#allocation2 + $0x234] sm:$0xf0]  ;;  %v2849_v34 = vld [vmem:[#allocation2 + $0x328] sm:$0xf]  ;;  %v2594_v39 = vor.u32 %v3630_v31, %v2593_v29  ;;  %v2531_v16 = vld [vmem:[#allocation2 + $0xb8] sm:$0xf0] }
  0x59   :  { %977 = vmatpush.bf16.msra.mxu0 %v2530_v48  ;;  %v3694_v35 = vld [vmem:[#allocation2 + $0x334] sm:$0xf0]  ;;  %v2449_v37 = vld [vmem:[#allocation2 + $0x8] sm:$0xf]  ;;  %v2722_v40 = vor.u32 %v3662_v33, %v2721_v32  ;;  %v3620_v48 = vld [vmem:[#allocation2 + $0xec] sm:$0xf] }
  0x5a   :  { %991 = vmatpush.bf16.msra.mxu1 %v2658_v49  ;;  %v3594_v38 = vld [vmem:[#allocation2 + $0x14] sm:$0xf0]  ;;  %v2577_v41 = vld [vmem:[#allocation2 + $0x108] sm:$0xf]  ;;  %v2850_v44 = vor.u32 %v3694_v35, %v2849_v34  ;;  %v2563_v49 = vld [vmem:[#allocation2 + $0xf8] sm:$0xf0] }
  0x5b   :  { %1005 = vmatpush.bf16.msra.mxu2 %v2786_v50  ;;  %v3626_v42 = vld [vmem:[#allocation2 + $0x114] sm:$0xf0]  ;;  %v2705_v43 = vld [vmem:[#allocation2 + $0x208] sm:$0xf]  ;;  %v3652_v50 = vld [vmem:[#allocation2 + $0x1ec] sm:$0xf]  ;;  %v2450_v51 = vor.u32 %v3594_v38, %v2449_v37 }
  0x5c   :  { %1019 = vmatpush.bf16.msra.mxu3 %v2914_v54  ;;  %v3658_v45 = vld [vmem:[#allocation2 + $0x214] sm:$0xf0]  ;;  %v2833_v46 = vld [vmem:[#allocation2 + $0x308] sm:$0xf]  ;;  %v2819_v54 = vld [vmem:[#allocation2 + $0x2f8] sm:$0xf0]  ;;  %v2578_v56 = vor.u32 %v3626_v42, %v2577_v41 }
  0x5d   :  { %978 = vmatpush.bf16.msra.mxu0 %v2514_v63  ;;  %v3690_v47 = vld [vmem:[#allocation2 + $0x314] sm:$0xf0]  ;;  %v2706_v57 = vor.u32 %v3658_v45, %v2705_v43  ;;  %v2566_v63 = vor.u32 %v3620_v48, %v2563_v49  ;;  %v3644_v17 = vld [vmem:[#allocation2 + $0x1ac] sm:$0xf]  ;;  %v2659_v19 = vld [vmem:[#allocation2 + $0x1b8] sm:$0xf0] }
  0x5e   :  { %992 = vmatpush.bf16.msra.mxu1 %v2642_v1  ;;  %v2834_v62 = vor.u32 %v3690_v47, %v2833_v46  ;;  %v2694_v1 = vor.u32 %v3652_v50, %v2691_v52  ;;  %v3676_v20 = vld [vmem:[#allocation2 + $0x2ac] sm:$0xf]  ;;  %v2787_v21 = vld [vmem:[#allocation2 + $0x2b8] sm:$0xf0] }
  0x5f   :  { %1006 = vmatpush.bf16.msra.mxu2 %v2770_v2  ;;  %v2822_v2 = vor.u32 %v3684_v53, %v2819_v54  ;;  %v3708_v22 = vld [vmem:[#allocation2 + $0x3ac] sm:$0xf]  ;;  %v2915_v23 = vld [vmem:[#allocation2 + $0x3b8] sm:$0xf0] }
  0x60   :  { %1020 = vmatpush.bf16.msra.mxu3 %v2898_v6  ;;  %v2950_v6 = vor.u32 %v3716_v58, %v2947_v61  ;;  %v3608_v27 = vld [vmem:[#allocation2 + $0x8c] sm:$0xf]  ;;  %v2515_v28 = vld [vmem:[#allocation2 + $0x98] sm:$0xf0] }
  0x61   :  { %979 = vmatpush.bf16.msra.mxu0 %v2498_v12  ;;  %v2550_v12 = vor.u32 %v3616_v3, %v2547_v4  ;;  %v3640_v29 = vld [vmem:[#allocation2 + $0x18c] sm:$0xf]  ;;  %v2643_v31 = vld [vmem:[#allocation2 + $0x198] sm:$0xf0] }
  0x62   :  { %993 = vmatpush.bf16.msra.mxu1 %v2626_v13  ;;  %v2678_v13 = vor.u32 %v3648_v5, %v2675_v7  ;;  %v3672_v32 = vld [vmem:[#allocation2 + $0x28c] sm:$0xf]  ;;  %v2771_v33 = vld [vmem:[#allocation2 + $0x298] sm:$0xf0]  ;;  %v2646_v37 = vor.u32 %v3640_v29, %v2643_v31  ;;  %v3193_v31 = vld [vmem:[#allocation4 + $0x1e0] sm:$0xf] }
  0x63   :  { %1007 = vmatpush.bf16.msra.mxu2 %v2754_v14  ;;  %v2806_v14 = vor.u32 %v3680_v8, %v2803_v9  ;;  %v3704_v34 = vld [vmem:[#allocation2 + $0x38c] sm:$0xf]  ;;  %v2899_v35 = vld [vmem:[#allocation2 + $0x398] sm:$0xf0]  ;;  %v2774_v38 = vor.u32 %v3672_v32, %v2771_v33  ;;  %v3781_v32 = vld [vmem:[#allocation4 + $0x1ec] sm:$0xf0] }
  0x64   :  { %1021 = vmatpush.bf16.msra.mxu3 %v2882_v18  ;;  %v2934_v18 = vor.u32 %v3712_v10, %v2931_v11  ;;  %v3636_v41 = vld [vmem:[#allocation2 + $0x16c] sm:$0xf]  ;;  %v2902_v42 = vor.u32 %v3704_v34, %v2899_v35  ;;  %v2627_v43 = vld [vmem:[#allocation2 + $0x178] sm:$0xf0]  ;;  %v3049_v33 = vld [vmem:[#allocation4 + $0xc0] sm:$0xf]  ;;  %v3194_v35 = vor.u32 %v3781_v32, %v3193_v31 }
  0x65   :  { %980 = vmatpush.bf16.msra.mxu0 %v2482_v24  ;;  %v2534_v24 = vor.u32 %v3612_v15, %v2531_v16  ;;  %v2755_v45 = vld [vmem:[#allocation2 + $0x278] sm:$0xf0]  ;;  %v3700_v46 = vld [vmem:[#allocation2 + $0x36c] sm:$0xf]  ;;  %v2630_v49 = vor.u32 %v3636_v41, %v2627_v43  ;;  %v3745_v34 = vld [vmem:[#allocation4 + $0xcc] sm:$0xf0] }
  0x66   :  { %994 = vmatpush.bf16.msra.mxu1 %v2610_v25  ;;  %v2662_v25 = vor.u32 %v3644_v17, %v2659_v19  ;;  %v2883_v47 = vld [vmem:[#allocation2 + $0x378] sm:$0xf0]  ;;  %v3632_v53 = vld [vmem:[#allocation2 + $0x14c] sm:$0xf]  ;;  %v3017_v43 = vld [vmem:[#allocation4 + $0x80] sm:$0xf] }
  0x67   :  { %1008 = vmatpush.bf16.msra.mxu2 %v2738_v26  ;;  %v2790_v26 = vor.u32 %v3676_v20, %v2787_v21  ;;  %v2483_v52 = vld [vmem:[#allocation2 + $0x58] sm:$0xf0]  ;;  %v2886_v54 = vor.u32 %v3700_v46, %v2883_v47  ;;  %v3696_v61 = vld [vmem:[#allocation2 + $0x34c] sm:$0xf]  ;;  %v3773_v46 = vld [vmem:[#allocation4 + $0x1ac] sm:$0xf0] }
  0x68   :  { %1022 = vmatpush.bf16.msra.mxu3 %v2866_v30  ;;  %v2918_v30 = vor.u32 %v3708_v22, %v2915_v23  ;;  %v2739_v58 = vld [vmem:[#allocation2 + $0x258] sm:$0xf0]  ;;  %v3596_v3 = vld [vmem:[#allocation2 + $0x2c] sm:$0xf]  ;;  %v4075_v31 = vld [vmem:[%s4122_s2] sm:$0xf] }
  0x69   :  { %981 = vmatpush.bf16.msra.mxu0 %v2466_v36  ;;  %v2518_v36 = vor.u32 %v3608_v27, %v2515_v28  ;;  %v2467_v4 = vld [vmem:[#allocation2 + $0x38] sm:$0xf0]  ;;  %v3628_v5 = vld [vmem:[#allocation2 + $0x12c] sm:$0xf] }
  0x6a   :  { %995 = vmatpush.bf16.msra.mxu1 %v2594_v39  ;;  %v3604_v39 = vld [vmem:[#allocation2 + $0x6c] sm:$0xf]  ;;  %v2595_v7 = vld [vmem:[#allocation2 + $0x138] sm:$0xf0] }
  0x6b   :  { %1009 = vmatpush.bf16.msra.mxu2 %v2722_v40  ;;  %v2499_v40 = vld [vmem:[#allocation2 + $0x78] sm:$0xf0]  ;;  %v3660_v8 = vld [vmem:[#allocation2 + $0x22c] sm:$0xf] }
  0x6c   :  { %1023 = vmatpush.bf16.msra.mxu3 %v2850_v44  ;;  %v3668_v44 = vld [vmem:[#allocation2 + $0x26c] sm:$0xf]  ;;  %v2502_v48 = vor.u32 %v3604_v39, %v2499_v40  ;;  %v2723_v9 = vld [vmem:[#allocation2 + $0x238] sm:$0xf0]  ;;  %v3033_v39 = vld [vmem:[#allocation4 + $0xa0] sm:$0xf] }
  0x6d   :  { %982 = vmatpush.bf16.msra.mxu0 %v2450_v51  ;;  %v2758_v50 = vor.u32 %v3668_v44, %v2755_v45  ;;  %v3600_v51 = vld [vmem:[#allocation2 + $0x4c] sm:$0xf]  ;;  %v2851_v11 = vld [vmem:[#allocation2 + $0x338] sm:$0xf0]  ;;  %v2726_v15 = vor.u32 %v3660_v8, %v2723_v9  ;;  %v3741_v40 = vld [vmem:[#allocation4 + $0xac] sm:$0xf0] }
  0x6e   :  { %996 = vmatpush.bf16.msra.mxu1 %v2578_v56  ;;  %v2611_v56 = vld [vmem:[#allocation2 + $0x158] sm:$0xf0]  ;;  %v3692_v10 = vld [vmem:[#allocation2 + $0x32c] sm:$0xf]  ;;  %v3737_v44 = vld [vmem:[#allocation4 + $0x8c] sm:$0xf0] }
  0x6f   :  { %1010 = vmatpush.bf16.msra.mxu2 %v2706_v57  ;;  %v3664_v57 = vld [vmem:[#allocation2 + $0x24c] sm:$0xf]  ;;  %v2451_v16 = vld [vmem:[#allocation2 + $0x18] sm:$0xf0]  ;;  %v2854_v19 = vor.u32 %v3692_v10, %v2851_v11  ;;  %v3161_v45 = vld [vmem:[#allocation4 + $0x1a0] sm:$0xf]  ;;  %v3018_v47 = vor.u32 %v3737_v44, %v3017_v43 }
  0x70   :  { %1024 = vmatpush.bf16.msra.mxu3 %v2834_v62  ;;  %983 = vmatmul.bf16.vlgmr.msra.gmra.mxu0 %v4050_v59  ;;  %v2867_v62 = vld [vmem:[#allocation2 + $0x358] sm:$0xf0]  ;;  %v3624_v17 = vld [vmem:[#allocation2 + $0x10c] sm:$0xf]  ;;  %v3097_v8 = vld [vmem:[#allocation4 + $0x120] sm:$0xf] }
  0x71   :  { %1031 = vmatpush.bf16.msrb.mxu0 %v2566_v63  ;;  %997 = vmatmul.bf16.vlgmr.msra.gmra.mxu1 %v4054_v0  ;;  %v2486_v63 = vor.u32 %v3600_v51, %v2483_v52  ;;  %v3656_v20 = vld [vmem:[#allocation2 + $0x20c] sm:$0xf]  ;;  %v2707_v21 = vld [vmem:[#allocation2 + $0x218] sm:$0xf0]  ;;  %v3769_v51 = vld [vmem:[#allocation4 + $0x18c] sm:$0xf0] }
  0x72   :  { %1045 = vmatpush.bf16.msrb.mxu1 %v2694_v1  ;;  %1011 = vmatmul.bf16.vlgmr.msra.gmra.mxu2 %v4048_v55  ;;  %v2614_v1 = vor.u32 %v3632_v53, %v2611_v56  ;;  %v3688_v22 = vld [vmem:[#allocation2 + $0x30c] sm:$0xf]  ;;  %v2835_v23 = vld [vmem:[#allocation2 + $0x318] sm:$0xf0]  ;;  %v2710_v28 = vor.u32 %v3656_v20, %v2707_v21  ;;  %v3729_v52 = vld [vmem:[#allocation4 + $0x4c] sm:$0xf0] }
  0x73   :  { %1059 = vmatpush.bf16.msrb.mxu2 %v2822_v2  ;;  %1025 = vmatmul.bf16.vlgmr.msra.gmra.mxu3 %v4052_v60  ;;  %v2742_v2 = vor.u32 %v3664_v57, %v2739_v58  ;;  %v2838_v29 = vor.u32 %v3688_v22, %v2835_v23  ;;  %v3765_v56 = vld [vmem:[#allocation4 + $0x16c] sm:$0xf0]  ;;  %v2969_v57 = vld [vmem:[#allocation4 + $0x20] sm:$0xf]  ;;  %v3743_v11 = vld [vmem:[#allocation4 + $0xc4] sm:$0xf] }
  0x74   :  { %1073 = vmatpush.bf16.msrb.mxu3 %v2950_v6  ;;  %v2870_v6 = vor.u32 %v3696_v61, %v2867_v62  ;;  %v3725_v58 = vld [vmem:[#allocation4 + $0x2c] sm:$0xf0]  ;;  %v3739_v21 = vld [vmem:[#allocation4 + $0xa4] sm:$0xf]  ;;  %v3035_v22 = vld [vmem:[#allocation4 + $0xb0] sm:$0xf0] }
  0x75   :  { %1032 = vmatpush.bf16.msrb.mxu0 %v2550_v12  ;;  %v2470_v12 = vor.u32 %v3596_v3, %v2467_v4  ;;  %v2970_v62 = vor.u32 %v3725_v58, %v2969_v57  ;;  %v3721_v3 = vld [vmem:[#allocation4 + $0xc] sm:$0xf0]  ;;  %v3003_v43 = vld [vmem:[#allocation4 + $0x70] sm:$0xf0] }
  0x76   :  { %1046 = vmatpush.bf16.msrb.mxu1 %v2678_v13  ;;  %v3592_v13 = vld [vmem:[#allocation2 + $0xc] sm:$0xf]  ;;  %v3757_v9 = vld [vmem:[#allocation4 + $0x12c] sm:$0xf0] }
  0x77   :  { %1060 = vmatpush.bf16.msrb.mxu2 %v2806_v14  ;;  %v2598_v14 = vor.u32 %v3628_v5, %v2595_v7  ;;  %v3747_v5 = vld [vmem:[#allocation4 + $0xe4] sm:$0xf] }
  0x78   :  { %1074 = vmatpush.bf16.msrb.mxu3 %v2934_v18  ;;  %v2579_v18 = vld [vmem:[#allocation2 + $0x118] sm:$0xf0] }
  0x79   :  { %1033 = vmatpush.bf16.msrb.mxu0 %v2534_v24  ;;  %v3065_v24 = vld [vmem:[#allocation4 + $0xe0] sm:$0xf]  ;;  %v2582_v27 = vor.u32 %v3624_v17, %v2579_v18  ;;  %v3813_v18 = vld [vmem:[#allocation4 + $0x2ec] sm:$0xf0] }
  0x7a   :  { %1047 = vmatpush.bf16.msrb.mxu1 %v2662_v25  ;;  %v3749_v25 = vld [vmem:[#allocation4 + $0xec] sm:$0xf0]  ;;  %v3321_v17 = vld [vmem:[#allocation4 + $0x2e0] sm:$0xf] }
  0x7b   :  { %1061 = vmatpush.bf16.msrb.mxu2 %v2790_v26  ;;  %v2454_v26 = vor.u32 %v3592_v13, %v2451_v16  ;;  %v3051_v13 = vld [vmem:[#allocation4 + $0xd0] sm:$0xf0]  ;;  %v3322_v23 = vor.u32 %v3813_v18, %v3321_v17 }
  0x7c   :  { %1075 = vmatpush.bf16.msrb.mxu3 %v2918_v30  ;;  %v3066_v30 = vor.u32 %v3749_v25, %v3065_v24  ;;  %v3054_v20 = vor.u32 %v3743_v11, %v3051_v13  ;;  %v3195_v24 = vld [vmem:[#allocation4 + $0x1f0] sm:$0xf0]  ;;  %v3793_v13 = vld [vmem:[#allocation4 + $0x24c] sm:$0xf0] }
  0x7d   :  { %1034 = vmatpush.bf16.msrb.mxu0 %v2518_v36  ;;  %v3177_v36 = vld [vmem:[#allocation4 + $0x1c0] sm:$0xf]  ;;  %v2955_v17 = vld [vmem:[#allocation4 + $0x10] sm:$0xf0] }
  0x7e   :  { %1048 = vmatpush.bf16.msrb.mxu1 %v2646_v37  ;;  %v3777_v37 = vld [vmem:[#allocation4 + $0x1cc] sm:$0xf0] }
  0x7f   :  { %1062 = vmatpush.bf16.msrb.mxu2 %v2774_v38  ;;  %v3050_v38 = vor.u32 %v3745_v34, %v3049_v33  ;;  %v3178_v41 = vor.u32 %v3777_v37, %v3177_v36  ;;  %v3038_v33 = vor.u32 %v3739_v21, %v3035_v22  ;;  %v3735_v34 = vld [vmem:[#allocation4 + $0x84] sm:$0xf]  ;;  %v215_v36 = vperm.slane %v4075_v31, 0 }
  0x80   :  { %1076 = vmatpush.bf16.msrb.mxu3 %v2902_v42  ;;  %v3034_v42 = vor.u32 %v3741_v40, %v3033_v39  ;;  %v3805_v39 = vld [vmem:[#allocation4 + $0x2ac] sm:$0xf0]  ;;  %v3771_v40 = vld [vmem:[#allocation4 + $0x1a4] sm:$0xf] }
  0x81   :  { %1035 = vmatpush.bf16.msrb.mxu0 %v2502_v48  ;;  %v3001_v48 = vld [vmem:[#allocation4 + $0x60] sm:$0xf] }
  0x82   :  { %1049 = vmatpush.bf16.msrb.mxu1 %v2630_v49  ;;  %v3733_v49 = vld [vmem:[#allocation4 + $0x6c] sm:$0xf0] }
  0x83   :  { %1063 = vmatpush.bf16.msrb.mxu2 %v2758_v50  ;;  %v3002_v50 = vor.u32 %v3733_v49, %v3001_v48  ;;  %v3273_v49 = vld [vmem:[#allocation4 + $0x280] sm:$0xf] }
  0x84   :  { %1077 = vmatpush.bf16.msrb.mxu3 %v2886_v54  ;;  %v3129_v54 = vld [vmem:[#allocation4 + $0x160] sm:$0xf] }
  0x85   :  { %1036 = vmatpush.bf16.msrb.mxu0 %v2486_v63  ;;  %v3130_v61 = vor.u32 %v3765_v56, %v3129_v54  ;;  %v3113_v63 = vld [vmem:[#allocation4 + $0x140] sm:$0xf] }
  0x86   :  { %1050 = vmatpush.bf16.msrb.mxu1 %v2614_v1  ;;  %v3761_v1 = vld [vmem:[#allocation4 + $0x14c] sm:$0xf0] }
  0x87   :  { %1064 = vmatpush.bf16.msrb.mxu2 %v2742_v2  ;;  %v2953_v2 = vld [vmem:[#allocation4] sm:$0xf]  ;;  %v3114_v4 = vor.u32 %v3761_v1, %v3113_v63  ;;  %v3763_v63 = vld [vmem:[#allocation4 + $0x164] sm:$0xf] }
  0x88   :  { %1078 = vmatpush.bf16.msrb.mxu3 %v2870_v6  ;;  %v3067_v6 = vld [vmem:[#allocation4 + $0xf0] sm:$0xf0]  ;;  %v2954_v7 = vor.u32 %v3721_v3, %v2953_v2  ;;  %v3723_v3 = vld [vmem:[#allocation4 + $0x24] sm:$0xf] }
  0x89   :  { %1037 = vmatpush.bf16.msrb.mxu0 %v2470_v12  ;;  %v3070_v10 = vor.u32 %v3747_v5, %v3067_v6  ;;  %v3098_v12 = vor.u32 %v3757_v9, %v3097_v8  ;;  %v3131_v6 = vld [vmem:[#allocation4 + $0x170] sm:$0xf0] }
  0x8a   :  { %1051 = vmatpush.bf16.msrb.mxu1 %v2598_v14  ;;  %v3081_v14 = vld [vmem:[#allocation4 + $0x100] sm:$0xf]  ;;  %v3134_v9 = vor.u32 %v3763_v63, %v3131_v6  ;;  %v3025_v63 = vld [vmem:[#allocation4 + $0x88] sm:$0xf]  ;;  %v3291_v6 = vld [vmem:[#allocation4 + $0x2b0] sm:$0xf0] }
  0x8b   :  { %1065 = vmatpush.bf16.msrb.mxu2 %v2726_v15  ;;  %v3753_v15 = vld [vmem:[#allocation4 + $0x10c] sm:$0xf0] }
  0x8c   :  { %1079 = vmatpush.bf16.msrb.mxu3 %v2854_v19  ;;  %v3082_v16 = vor.u32 %v3753_v15, %v3081_v14  ;;  %v3779_v19 = vld [vmem:[#allocation4 + $0x1e4] sm:$0xf] }
  0x8d   :  { %1038 = vmatpush.bf16.msrb.mxu0 %v2454_v26  ;;  %v3198_v25 = vor.u32 %v3779_v19, %v3195_v24  ;;  %v3305_v26 = vld [vmem:[#allocation4 + $0x2c0] sm:$0xf]  ;;  %v3759_v14 = vld [vmem:[#allocation4 + $0x144] sm:$0xf]  ;;  %v3115_v19 = vld [vmem:[#allocation4 + $0x150] sm:$0xf0] }
  0x8e   :  { %1052 = vmatpush.bf16.msrb.mxu1 %v2582_v27  ;;  %v3809_v27 = vld [vmem:[#allocation4 + $0x2cc] sm:$0xf0]  ;;  %v3118_v21 = vor.u32 %v3759_v14, %v3115_v19  ;;  %v3073_v24 = vld [vmem:[#allocation4 + $0xe8] sm:$0xf]  ;;  %v3401_v14 = vld [vmem:[#allocation4 + $0x380] sm:$0xf] }
  0x8f   :  { %1066 = vmatpush.bf16.msrb.mxu2 %v2710_v28  ;;  %v3775_v28 = vld [vmem:[#allocation4 + $0x1c4] sm:$0xf] }
  0x90   :  { %1080 = vmatpush.bf16.msrb.mxu3 %v2838_v29  ;;  %1039 = vmatmul.bf16.vlgmr.msrb.gmra.mxu0 %v4050_v59  ;;  %v3162_v59 = vor.u32 %v3773_v46, %v3161_v45  ;;  %v3306_v29 = vor.u32 %v3809_v27, %v3305_v26  ;;  %v3163_v45 = vld [vmem:[#allocation4 + $0x1b0] sm:$0xf0]  ;;  %v3225_v26 = vld [vmem:[#allocation4 + $0x220] sm:$0xf]  ;;  %v3789_v27 = vld [vmem:[#allocation4 + $0x22c] sm:$0xf0] }
  0x91   :  { %1877 = vmatpush.bf16.msra.mxu0 %v3066_v30  ;;  %1053 = vmatmul.bf16.vlgmr.msrb.gmra.mxu1 %v4054_v0  ;;  %v3145_v0 = vld [vmem:[#allocation4 + $0x180] sm:$0xf]  ;;  %v3179_v30 = vld [vmem:[#allocation4 + $0x1d0] sm:$0xf0] }
  0x92   :  { %1891 = vmatpush.bf16.msra.mxu1 %v3194_v35  ;;  %1067 = vmatmul.bf16.vlgmr.msrb.gmra.mxu2 %v4048_v55  ;;  %v2985_v55 = vld [vmem:[#allocation4 + $0x40] sm:$0xf]  ;;  %v3182_v32 = vor.u32 %v3775_v28, %v3179_v30  ;;  %v3019_v35 = vld [vmem:[#allocation4 + $0x90] sm:$0xf0]  ;;  %v3755_v28 = vld [vmem:[#allocation4 + $0x124] sm:$0xf] }
  0x93   :  { %1081 = vmatmul.bf16.vlgmr.msrb.gmra.mxu3 %v4052_v60  ;;  %v3146_v60 = vor.u32 %v3769_v51, %v3145_v0  ;;  %v2986_v53 = vor.u32 %v3729_v52, %v2985_v55  ;;  %1905 = vmatpush.bf16.msra.mxu2 %v3322_v23  ;;  %v3022_v37 = vor.u32 %v3735_v34, %v3019_v35  ;;  %v3767_v0 = vld [vmem:[#allocation4 + $0x184] sm:$0xf]  ;;  %v2987_v52 = vld [vmem:[#allocation4 + $0x50] sm:$0xf0] }
  0x94   :  { %v3727_v55 = vld [vmem:[#allocation4 + $0x44] sm:$0xf]  ;;  %v3099_v34 = vld [vmem:[#allocation4 + $0x130] sm:$0xf0] }
  0x95   :  { %1878 = vmatpush.bf16.msra.mxu0 %v3050_v38  ;;  %v3289_v38 = vld [vmem:[#allocation4 + $0x2a0] sm:$0xf]  ;;  %v2990_v58 = vor.u32 %v3727_v55, %v2987_v52  ;;  %v3102_v35 = vor.u32 %v3755_v28, %v3099_v34  ;;  %v3841_v52 = vld [vmem:[#allocation4 + $0x3cc] sm:$0xf0]  ;;  %v3795_v28 = vld [vmem:[#allocation4 + $0x264] sm:$0xf] }
  0x96   :  { %1892 = vmatpush.bf16.msra.mxu1 %v3178_v41  ;;  %v3290_v44 = vor.u32 %v3805_v39, %v3289_v38  ;;  %v3785_v38 = vld [vmem:[#allocation4 + $0x20c] sm:$0xf0]  ;;  %v3433_v55 = vld [vmem:[#allocation4 + $0x3c0] sm:$0xf] }
  0x97   :  { %1906 = vmatpush.bf16.msra.mxu2 %v3306_v29 }
  0x99   :  { %1879 = vmatpush.bf16.msra.mxu0 %v3034_v42  ;;  %v3731_v42 = vld [vmem:[#allocation4 + $0x64] sm:$0xf] }
  0x9a   :  { %1893 = vmatpush.bf16.msra.mxu1 %v3162_v59  ;;  %v3166_v59 = vor.u32 %v3771_v40, %v3163_v45  ;;  %v3006_v48 = vor.u32 %v3731_v42, %v3003_v43  ;;  %v3057_v40 = vld [vmem:[#allocation4 + $0xc8] sm:$0xf]  ;;  %v3751_v42 = vld [vmem:[#allocation4 + $0x104] sm:$0xf]  ;;  %v3083_v43 = vld [vmem:[#allocation4 + $0x110] sm:$0xf0] }
  0x9b   :  { %1907 = vmatpush.bf16.msra.mxu2 %v3290_v44  ;;  %v3746_v45 = vld [vmem:[#allocation4 + $0xd4] sm:$0xf0] }
  0x9d   :  { %1880 = vmatpush.bf16.msra.mxu0 %v3018_v47 }
  0x9e   :  { %1894 = vmatpush.bf16.msra.mxu1 %v3146_v60 }
  0xa1   :  { %1881 = vmatpush.bf16.msra.mxu0 %v3002_v50  ;;  %v3801_v50 = vld [vmem:[#allocation4 + $0x28c] sm:$0xf0] }
  0xa2   :  { %1895 = vmatpush.bf16.msra.mxu1 %v3130_v61  ;;  %v3274_v60 = vor.u32 %v3801_v50, %v3273_v49  ;;  %v3257_v61 = vld [vmem:[#allocation4 + $0x260] sm:$0xf]  ;;  %v3811_v49 = vld [vmem:[#allocation4 + $0x2e4] sm:$0xf]  ;;  %v3323_v50 = vld [vmem:[#allocation4 + $0x2f0] sm:$0xf0] }
  0xa4   :  { %1908 = vmatpush.bf16.msra.mxu2 %v3274_v60  ;;  %v3807_v60 = vld [vmem:[#allocation4 + $0x2c4] sm:$0xf] }
  0xa5   :  { %1882 = vmatpush.bf16.msra.mxu0 %v2986_v53  ;;  %v3147_v53 = vld [vmem:[#allocation4 + $0x190] sm:$0xf0] }
  0xa6   :  { %1896 = vmatpush.bf16.msra.mxu1 %v3114_v4  ;;  %v3150_v56 = vor.u32 %v3767_v0, %v3147_v53  ;;  %v2971_v4 = vld [vmem:[#allocation4 + $0x30] sm:$0xf0]  ;;  %v3326_v0 = vor.u32 %v3811_v49, %v3323_v50  ;;  %v3041_v53 = vld [vmem:[#allocation4 + $0xa8] sm:$0xf] }
  0xa7   :  { %v2974_v11 = vor.u32 %v3723_v3, %v2971_v4  ;;  %v3837_v3 = vld [vmem:[#allocation4 + $0x3ac] sm:$0xf0]  ;;  %v3803_v4 = vld [vmem:[#allocation4 + $0x2a4] sm:$0xf]  ;;  %v2961_v50 = vld [vmem:[#allocation4 + $0x8] sm:$0xf] }
  0xa9   :  { %1883 = vmatpush.bf16.msra.mxu0 %v2970_v62  ;;  %v3797_v62 = vld [vmem:[#allocation4 + $0x26c] sm:$0xf0] }
  0xaa   :  { %1897 = vmatpush.bf16.msra.mxu1 %v3098_v12  ;;  %v3258_v5 = vor.u32 %v3797_v62, %v3257_v61  ;;  %v3241_v12 = vld [vmem:[#allocation4 + $0x240] sm:$0xf]  ;;  %v216_v61 = vperm.slane %v4075_v31, 1 }
  0xab   :  { %v3242_v18 = vor.u32 %v3793_v13, %v3241_v12  ;;  %v3009_v12 = vld [vmem:[#allocation4 + $0x68] sm:$0xf]  ;;  %v3734_v13 = vld [vmem:[#allocation4 + $0x74] sm:$0xf0] }
  0xac   :  { %1909 = vmatpush.bf16.msra.mxu2 %v3258_v5 }
  0xad   :  { %1884 = vmatpush.bf16.msra.mxu0 %v2954_v7 }
  0xae   :  { %1898 = vmatpush.bf16.msra.mxu1 %v3082_v16  ;;  %v886_v47 = vpop.f32.mrf.mxu1  ;;  %v3719_v16 = vld [vmem:[#allocation4 + $0x4] sm:$0xf] }
  0xb0   :  { %v872_v41 = vpop.f32.mrf.mxu0  ;;  %1910 = vmatpush.bf16.msra.mxu2 %v3242_v18  ;;  %v3275_v18 = vld [vmem:[#allocation4 + $0x290] sm:$0xf0] }
  0xb1   :  { %1933 = vmatpush.bf16.msrb.mxu0 %v3070_v10  ;;  %v873_v46 = vadd.f32 %v872_v41, %v215_v36 }
  0xb2   :  { %1947 = vmatpush.bf16.msrb.mxu1 %v3198_v25  ;;  %v2958_v25 = vor.u32 %v3719_v16, %v2955_v17  ;;  %v3799_v16 = vld [vmem:[#allocation4 + $0x284] sm:$0xf] }
  0xb3   :  { %v887_v51 = vadd.f32 %v886_v47, %v873_v46  ;;  %v3086_v46 = vor.u32 %v3751_v42, %v3083_v43  ;;  %v3449_v47 = vld [vmem:[#allocation4 + $0x3e0] sm:$0xf] }
  0xb5   :  { %1934 = vmatpush.bf16.msrb.mxu0 %v3054_v20  ;;  %v900_v54 = vpop.f32.mrf.mxu2 }
  0xb6   :  { %1948 = vmatpush.bf16.msrb.mxu1 %v3182_v32  ;;  %v901_v1 = vadd.f32 %v900_v54, %v887_v51  ;;  %v888_v8 = vpop.f32.mrf.mxu1  ;;  %v3750_v32 = vld [vmem:[#allocation4 + $0xf4] sm:$0xf0]  ;;  %v3058_v51 = vor.u32 %v3746_v45, %v3057_v40  ;;  %v3369_v40 = vld [vmem:[#allocation4 + $0x340] sm:$0xf]  ;;  %v3791_v45 = vld [vmem:[#allocation4 + $0x244] sm:$0xf] }
  0xb7   :  { %v3074_v39 = vor.u32 %v3750_v32, %v3073_v24  ;;  %v3742_v54 = vld [vmem:[#allocation4 + $0xb4] sm:$0xf0] }
  0xb8   :  { %v914_v57 = vpop.f32.mrf.mxu3  ;;  %v874_v2 = vpop.f32.mrf.mxu0  ;;  %v3042_v62 = vor.u32 %v3742_v54, %v3041_v53  ;;  %v3730_v24 = vld [vmem:[#allocation4 + $0x54] sm:$0xf0]  ;;  %v3787_v53 = vld [vmem:[#allocation4 + $0x224] sm:$0xf]  ;;  %v3748_v54 = vld [vmem:[#allocation4 + $0xec] sm:$0xf] }
  0xb9   :  { %1935 = vmatpush.bf16.msrb.mxu0 %v3038_v33  ;;  %v875_v7 = vadd.f32 %v874_v2, %v215_v36  ;;  %v915_v15 = vadd.f32 %v914_v57, %v901_v1  ;;  %v3226_v33 = vor.u32 %v3789_v27, %v3225_v26  ;;  %v3307_v57 = vld [vmem:[#allocation4 + $0x2d0] sm:$0xf0]  ;;  %v3738_v1 = vld [vmem:[#allocation4 + $0x94] sm:$0xf0]  ;;  %v3417_v2 = vld [vmem:[#allocation4 + $0x3a0] sm:$0xf] }
  0xba   :  { %1949 = vmatpush.bf16.msrb.mxu1 %v3166_v59  ;;  %v3845_v59 = vld [vmem:[#allocation4 + $0x3ec] sm:$0xf0]  ;;  %v3418_v5 = vor.u32 %v3837_v3, %v3417_v2  ;;  %v3385_v26 = vld [vmem:[#allocation4 + $0x360] sm:$0xf] }
  0xbb   :  { %v889_v10 = vadd.f32 %v888_v8, %v875_v7  ;;  %v1087_v29 = vmax.f32 %v915_v15, 0.0  ;;  %1911 = vmatpush.bf16.msra.mxu2 %v3226_v33  ;;  %v3294_v8 = vor.u32 %v3803_v4, %v3291_v6  ;;  %v3833_v15 = vld [vmem:[#allocation4 + $0x38c] sm:$0xf0]  ;;  %v3744_v4 = vld [vmem:[#allocation4 + $0xcc] sm:$0xf] }
  0xbc   :  { %v3402_v17 = vor.u32 %v3833_v15, %v3401_v14  ;;  %v3829_v27 = vld [vmem:[#allocation4 + $0x36c] sm:$0xf0]  ;;  %v3185_v15 = vld [vmem:[#allocation4 + $0x1c8] sm:$0xf] }
  0xbd   :  { %1936 = vmatpush.bf16.msrb.mxu0 %v3022_v37  ;;  %v902_v20 = vpop.f32.mrf.mxu2  ;;  %v3209_v37 = vld [vmem:[#allocation4 + $0x200] sm:$0xf] }
  0xbe   :  { %1950 = vmatpush.bf16.msrb.mxu1 %v3150_v56  ;;  %v903_v22 = vadd.f32 %v902_v20, %v889_v10  ;;  %v3210_v41 = vor.u32 %v3785_v38, %v3209_v37  ;;  %v3434_v56 = vor.u32 %v3841_v52, %v3433_v55  ;;  %v3278_v20 = vor.u32 %v3799_v16, %v3275_v18  ;;  %v2977_v38 = vld [vmem:[#allocation4 + $0x28] sm:$0xf]  ;;  %v3353_v52 = vld [vmem:[#allocation4 + $0x320] sm:$0xf]  ;;  %v3778_v16 = vld [vmem:[#allocation4 + $0x1d4] sm:$0xf0] }
  0xbf   :  { %v3843_v18 = vld [vmem:[#allocation4 + $0x3e4] sm:$0xf] }
  0xc0   :  { %v916_v23 = vpop.f32.mrf.mxu3  ;;  %1912 = vmatpush.bf16.msra.mxu2 %v3210_v41  ;;  %v3825_v41 = vld [vmem:[#allocation4 + $0x34c] sm:$0xf0] }
  0xc1   :  { %1937 = vmatpush.bf16.msrb.mxu0 %v3006_v48  ;;  %v917_v30 = vadd.f32 %v916_v23, %v903_v22  ;;  %v3450_v48 = vor.u32 %v3845_v59, %v3449_v47  ;;  %v3010_v22 = vor.u32 %v3734_v13, %v3009_v12  ;;  %v2993_v23 = vld [vmem:[#allocation4 + $0x48] sm:$0xf]  ;;  %v3370_v43 = vor.u32 %v3825_v41, %v3369_v40  ;;  %v3783_v12 = vld [vmem:[#allocation4 + $0x204] sm:$0xf]  ;;  %v3211_v13 = vld [vmem:[#allocation4 + $0x210] sm:$0xf0] }
  0xc2   :  { %1951 = vmatpush.bf16.msrb.mxu1 %v3134_v9  ;;  %v2994_v37 = vor.u32 %v3730_v24, %v2993_v23  ;;  %v3186_v23 = vor.u32 %v3778_v16, %v3185_v15  ;;  %v3043_v24 = vld [vmem:[#allocation4 + $0xb8] sm:$0xf0] }
  0xc3   :  { %v1091_v36 = vmax.f32 %v917_v30, 0.0  ;;  %1919 = vmatpush.bf16.msra.mxu3 %v3450_v48  ;;  %v3259_v30 = vld [vmem:[#allocation4 + $0x270] sm:$0xf0] }
  0xc4   :  { %1961 = vmatpush.bf16.msrb.mxu2 %v3326_v0  ;;  %v3262_v34 = vor.u32 %v3795_v28, %v3259_v30  ;;  %v3722_v0 = vld [vmem:[#allocation4 + $0x14] sm:$0xf0]  ;;  %v217_v30 = vperm.slane %v4075_v31, 2 }
  0xc5   :  { %1938 = vmatpush.bf16.msrb.mxu0 %v2990_v58  ;;  %v4078_v44 = vpack.c.bf16 %v1091_v36, %v1087_v29  ;;  %v3310_v58 = vor.u32 %v3807_v60, %v3307_v57  ;;  %v3386_v29 = vor.u32 %v3829_v27, %v3385_v26  ;;  %v3821_v60 = vld [vmem:[#allocation4 + $0x32c] sm:$0xf0]  ;;  %v2962_v3 = vor.u32 %v3722_v0, %v2961_v50  ;;  %v3435_v26 = vld [vmem:[#allocation4 + $0x3d0] sm:$0xf0]  ;;  %v3169_v27 = vld [vmem:[#allocation4 + $0x1a8] sm:$0xf] }
  0xc6   :  { %1952 = vmatpush.bf16.msrb.mxu1 %v3118_v21  ;;  %v3354_v57 = vor.u32 %v3821_v60, %v3353_v52  ;;  %v3774_v28 = vld [vmem:[#allocation4 + $0x1b4] sm:$0xf0]  ;;  %v3137_v50 = vld [vmem:[#allocation4 + $0x168] sm:$0xf]  ;;  %v3728_v60 = vld [vmem:[#allocation4 + $0x4c] sm:$0xf] }
  0xc7   :  { %1885 = vmatmul.bf16.vlgmr.msra.gmra.mxu0 %v4078_v44  ;;  %1920 = vmatpush.bf16.msra.mxu3 %v3434_v56  ;;  %v3075_v56 = vld [vmem:[#allocation4 + $0xf8] sm:$0xf0]  ;;  %v3766_v0 = vld [vmem:[#allocation4 + $0x174] sm:$0xf0] }
  0xc8   :  { %1962 = vmatpush.bf16.msrb.mxu2 %v3310_v58  ;;  %v3227_v58 = vld [vmem:[#allocation4 + $0x230] sm:$0xf0]  ;;  %v3078_v6 = vor.u32 %v3748_v54, %v3075_v56  ;;  %v3138_v54 = vor.u32 %v3766_v0, %v3137_v50  ;;  %v2995_v56 = vld [vmem:[#allocation4 + $0x58] sm:$0xf0] }
  0xc9   :  { %1939 = vmatpush.bf16.msrb.mxu0 %v2974_v11  ;;  %v3026_v11 = vor.u32 %v3738_v1, %v3025_v63  ;;  %v3201_v63 = vld [vmem:[#allocation4 + $0x1e8] sm:$0xf]  ;;  %v3782_v1 = vld [vmem:[#allocation4 + $0x1f4] sm:$0xf0]  ;;  %v3230_v2 = vor.u32 %v3787_v53, %v3227_v58  ;;  %v3387_v58 = vld [vmem:[#allocation4 + $0x370] sm:$0xf0] }
  0xca   :  { %1953 = vmatpush.bf16.msrb.mxu1 %v3102_v35 }
  0xcb   :  { %1921 = vmatpush.bf16.msra.mxu3 %v3418_v5 }
  0xcc   :  { %1963 = vmatpush.bf16.msrb.mxu2 %v3294_v8  ;;  %v3817_v8 = vld [vmem:[#allocation4 + $0x30c] sm:$0xf0] }
  0xcd   :  { %1940 = vmatpush.bf16.msrb.mxu0 %v2958_v25  ;;  %v928_v7 = vpop.f32.mrf.mxu0 }
  0xce   :  { %1954 = vmatpush.bf16.msrb.mxu1 %v3086_v46  ;;  %v929_v9 = vadd.f32 %v928_v7, %v216_v61  ;;  %v942_v10 = vpop.f32.mrf.mxu1  ;;  %v3243_v46 = vld [vmem:[#allocation4 + $0x250] sm:$0xf0]  ;;  %v3337_v7 = vld [vmem:[#allocation4 + $0x300] sm:$0xf] }
  0xcf   :  { %1922 = vmatpush.bf16.msra.mxu3 %v3402_v17  ;;  %v3246_v59 = vor.u32 %v3791_v45, %v3243_v46  ;;  %v3214_v17 = vor.u32 %v3783_v12, %v3211_v13  ;;  %v3105_v12 = vld [vmem:[#allocation4 + $0x128] sm:$0xf]  ;;  %v3758_v13 = vld [vmem:[#allocation4 + $0x134] sm:$0xf0] }
  0xd0   :  { %v943_v19 = vadd.f32 %v942_v10, %v929_v9  ;;  %1964 = vmatpush.bf16.msrb.mxu2 %v3278_v20  ;;  %v3202_v9 = vor.u32 %v3782_v1, %v3201_v63  ;;  %v3059_v10 = vld [vmem:[#allocation4 + $0xd8] sm:$0xf0]  ;;  %v3762_v63 = vld [vmem:[#allocation4 + $0x154] sm:$0xf0] }
  0xd1   :  { %1989 = vmatpush.bf16.msra.mxu0 %v3074_v39  ;;  %v3726_v39 = vld [vmem:[#allocation4 + $0x34] sm:$0xf0]  ;;  %v3062_v20 = vor.u32 %v3744_v4, %v3059_v10  ;;  %v2998_v4 = vor.u32 %v3728_v60, %v2995_v56  ;;  %v3823_v10 = vld [vmem:[#allocation4 + $0x344] sm:$0xf]  ;;  %v3768_v56 = vld [vmem:[#allocation4 + $0x18c] sm:$0xf] }
  0xd2   :  { %v2978_v49 = vor.u32 %v3726_v39, %v2977_v38  ;;  %v3153_v38 = vld [vmem:[#allocation4 + $0x188] sm:$0xf]  ;;  %v3770_v39 = vld [vmem:[#allocation4 + $0x194] sm:$0xf0] }
  0xd3   :  { %1923 = vmatpush.bf16.msra.mxu3 %v3386_v29  ;;  %v3806_v60 = vld [vmem:[#allocation4 + $0x2b4] sm:$0xf0] }
  0xd4   :  { %1965 = vmatpush.bf16.msrb.mxu2 %v3262_v34  ;;  %v3170_v34 = vor.u32 %v3774_v28, %v3169_v27  ;;  %v3089_v27 = vld [vmem:[#allocation4 + $0x108] sm:$0xf]  ;;  %v3754_v28 = vld [vmem:[#allocation4 + $0x114] sm:$0xf0] }
  0xd5   :  { %1990 = vmatpush.bf16.msra.mxu0 %v3058_v51  ;;  %v956_v21 = vpop.f32.mrf.mxu2  ;;  %v930_v33 = vpop.f32.mrf.mxu0 }
  0xd6   :  { %v970_v25 = vpop.f32.mrf.mxu3  ;;  %v957_v32 = vadd.f32 %v956_v21, %v943_v19  ;;  %v931_v35 = vadd.f32 %v930_v33, %v216_v61  ;;  %v944_v36 = vpop.f32.mrf.mxu1  ;;  %v3451_v19 = vld [vmem:[#allocation4 + $0x3f0] sm:$0xf0]  ;;  %v3740_v21 = vld [vmem:[#allocation4 + $0xac] sm:$0xf] }
  0xd7   :  { %1941 = vmatmul.bf16.vlgmr.msrb.gmra.mxu0 %v4078_v44  ;;  %1924 = vmatpush.bf16.msra.mxu3 %v3370_v43  ;;  %v3736_v33 = vld [vmem:[#allocation4 + $0x8c] sm:$0xf] }
  0xd8   :  { %v945_v42 = vadd.f32 %v944_v36, %v931_v35  ;;  %v971_v47 = vadd.f32 %v970_v25, %v957_v32  ;;  %1966 = vmatpush.bf16.msrb.mxu2 %v3246_v59  ;;  %v3839_v25 = vld [vmem:[#allocation4 + $0x3c4] sm:$0xf]  ;;  %v3046_v32 = vor.u32 %v3740_v21, %v3043_v24  ;;  %v3027_v35 = vld [vmem:[#allocation4 + $0x98] sm:$0xf0]  ;;  %v3732_v43 = vld [vmem:[#allocation4 + $0x6c] sm:$0xf]  ;;  %v3106_v21 = vor.u32 %v3758_v13, %v3105_v12 }
  0xd9   :  { %1991 = vmatpush.bf16.msra.mxu0 %v3042_v62  ;;  %v3438_v29 = vor.u32 %v3839_v25, %v3435_v26  ;;  %v3835_v36 = vld [vmem:[#allocation4 + $0x3a4] sm:$0xf]  ;;  %v3011_v59 = vld [vmem:[#allocation4 + $0x78] sm:$0xf0]  ;;  %v3355_v24 = vld [vmem:[#allocation4 + $0x330] sm:$0xf0] }
  0xda   :  { %v1088_v61 = vmax.f32 %v971_v47, 0.0  ;;  %v3154_v47 = vor.u32 %v3770_v39, %v3153_v38  ;;  %v3014_v52 = vor.u32 %v3732_v43, %v3011_v59  ;;  %v3090_v38 = vor.u32 %v3754_v28, %v3089_v27  ;;  %v3815_v39 = vld [vmem:[#allocation4 + $0x304] sm:$0xf]  ;;  %v3313_v59 = vld [vmem:[#allocation4 + $0x2c8] sm:$0xf] }
  0xdb   :  { %1925 = vmatpush.bf16.msra.mxu3 %v3354_v57  ;;  %v3827_v57 = vld [vmem:[#allocation4 + $0x364] sm:$0xf] }
  0xdc   :  { %1967 = vmatpush.bf16.msrb.mxu2 %v3230_v2  ;;  %v3390_v1 = vor.u32 %v3827_v57, %v3387_v58  ;;  %v3155_v57 = vld [vmem:[#allocation4 + $0x198] sm:$0xf0]  ;;  %v218_v58 = vperm.slane %v4075_v31, 3 }
  0xdd   :  { %1992 = vmatpush.bf16.msra.mxu0 %v3026_v11  ;;  %v958_v48 = vpop.f32.mrf.mxu2  ;;  %v3338_v11 = vor.u32 %v3817_v8, %v3337_v7  ;;  %v3123_v31 = vld [vmem:[#allocation4 + $0x158] sm:$0xf0] }
  0xde   :  { %v959_v51 = vadd.f32 %v958_v48, %v945_v42  ;;  %v972_v55 = vpop.f32.mrf.mxu3  ;;  %v3030_v42 = vor.u32 %v3736_v33, %v3027_v35  ;;  %v3831_v48 = vld [vmem:[#allocation4 + $0x384] sm:$0xf] }
  0xdf   :  { %1926 = vmatpush.bf16.msra.mxu3 %v3338_v11  ;;  %v3371_v11 = vld [vmem:[#allocation4 + $0x350] sm:$0xf0] }
  0xe0   :  { %v973_v62 = vadd.f32 %v972_v55, %v959_v51  ;;  %1968 = vmatpush.bf16.msrb.mxu2 %v3214_v17  ;;  %v3374_v16 = vor.u32 %v3823_v10, %v3371_v11  ;;  %v3760_v11 = vld [vmem:[#allocation4 + $0x14c] sm:$0xf] }
  0xe1   :  { %1993 = vmatpush.bf16.msra.mxu0 %v3010_v22  ;;  %v3454_v22 = vor.u32 %v3843_v18, %v3451_v19  ;;  %v3720_v19 = vld [vmem:[#allocation4 + $0xc] sm:$0xf] }
  0xe2   :  { %v1092_v5 = vmax.f32 %v973_v62, 0.0  ;;  %v3121_v62 = vld [vmem:[#allocation4 + $0x148] sm:$0xf] }
  0xe3   :  { %1975 = vmatpush.bf16.msrb.mxu3 %v3454_v22  ;;  %v3122_v8 = vor.u32 %v3762_v63, %v3121_v62  ;;  %v2963_v22 = vld [vmem:[#allocation4 + $0x18] sm:$0xf0]  ;;  %v3281_v62 = vld [vmem:[#allocation4 + $0x288] sm:$0xf]  ;;  %v3802_v63 = vld [vmem:[#allocation4 + $0x294] sm:$0xf0] }
  0xe4   :  { %v4083_v14 = vpack.c.bf16 %v1092_v5, %v1088_v61  ;;  %v3724_v5 = vld [vmem:[#allocation4 + $0x2c] sm:$0xf]  ;;  %v2966_v35 = vor.u32 %v3720_v19, %v2963_v22  ;;  %v3126_v19 = vor.u32 %v3760_v11, %v3123_v31  ;;  %v3107_v22 = vld [vmem:[#allocation4 + $0x138] sm:$0xf0] }
  0xe5   :  { %1994 = vmatpush.bf16.msra.mxu0 %v2994_v37  ;;  %v3419_v37 = vld [vmem:[#allocation4 + $0x3b0] sm:$0xf0]  ;;  %v3792_v11 = vld [vmem:[#allocation4 + $0x24c] sm:$0xf]  ;;  %v3251_v31 = vld [vmem:[#allocation4 + $0x258] sm:$0xf0] }
  0xe6   :  { %1899 = vmatmul.bf16.vlgmr.msra.gmra.mxu1 %v4083_v14  ;;  %v3422_v40 = vor.u32 %v3835_v36, %v3419_v37  ;;  %v3329_v36 = vld [vmem:[#allocation4 + $0x2e8] sm:$0xf]  ;;  %v3814_v37 = vld [vmem:[#allocation4 + $0x2f4] sm:$0xf0] }
  0xe7   :  { %2003 = vmatpush.bf16.msra.mxu1 %v3202_v9  ;;  %1976 = vmatpush.bf16.msrb.mxu3 %v3438_v29  ;;  %v2979_v9 = vld [vmem:[#allocation4 + $0x38] sm:$0xf0]  ;;  %v3780_v29 = vld [vmem:[#allocation4 + $0x1ec] sm:$0xf]  ;;  %v3330_v43 = vor.u32 %v3814_v37, %v3329_v36  ;;  %v3217_v36 = vld [vmem:[#allocation4 + $0x208] sm:$0xf] }
  0xe8   :  { %v2982_v18 = vor.u32 %v3724_v5, %v2979_v9  ;;  %v3786_v37 = vld [vmem:[#allocation4 + $0x214] sm:$0xf0] }
  0xe9   :  { %1995 = vmatpush.bf16.msra.mxu0 %v2978_v49  ;;  %v3403_v49 = vld [vmem:[#allocation4 + $0x390] sm:$0xf0] }
  0xea   :  { %v3406_v51 = vor.u32 %v3831_v48, %v3403_v49  ;;  %v3810_v48 = vld [vmem:[#allocation4 + $0x2d4] sm:$0xf0] }
  0xeb   :  { %2004 = vmatpush.bf16.msra.mxu1 %v3186_v23  ;;  %1977 = vmatpush.bf16.msrb.mxu3 %v3422_v40  ;;  %v3819_v23 = vld [vmem:[#allocation4 + $0x324] sm:$0xf]  ;;  %v3339_v40 = vld [vmem:[#allocation4 + $0x310] sm:$0xf0]  ;;  %v3314_v0 = vor.u32 %v3810_v48, %v3313_v59 }
  0xec   :  { %v3342_v49 = vor.u32 %v3815_v39, %v3339_v40  ;;  %v3812_v39 = vld [vmem:[#allocation4 + $0x2ec] sm:$0xf]  ;;  %v3331_v40 = vld [vmem:[#allocation4 + $0x2f8] sm:$0xf0] }
  0xed   :  { %1996 = vmatpush.bf16.msra.mxu0 %v2962_v3  ;;  %v984_v41 = vpop.f32.mrf.mxu0 }
  0xee   :  { %v985_v45 = vadd.f32 %v984_v41, %v217_v30  ;;  %v998_v46 = vpop.f32.mrf.mxu1 }
  0xef   :  { %2005 = vmatpush.bf16.msra.mxu1 %v3170_v34  ;;  %1978 = vmatpush.bf16.msrb.mxu3 %v3406_v51  ;;  %v3772_v51 = vld [vmem:[#allocation4 + $0x1ac] sm:$0xf] }
  0xf0   :  { %1997 = vmatmul.bf16.vlgmr.msra.gmra.mxu0 %v4078_v44  ;;  %v999_v55 = vadd.f32 %v998_v46, %v985_v45  ;;  %v3776_v45 = vld [vmem:[#allocation4 + $0x1cc] sm:$0xf]  ;;  %v3187_v46 = vld [vmem:[#allocation4 + $0x1d8] sm:$0xf0] }
  0xf1   :  { %2045 = vmatpush.bf16.msrb.mxu0 %v3078_v6  ;;  %v3190_v50 = vor.u32 %v3776_v45, %v3187_v46  ;;  %v3846_v45 = vld [vmem:[#allocation4 + $0x3f4] sm:$0xf0]  ;;  %v3218_v46 = vor.u32 %v3786_v37, %v3217_v36  ;;  %v3836_v36 = vld [vmem:[#allocation4 + $0x3ac] sm:$0xf]  ;;  %v3427_v37 = vld [vmem:[#allocation4 + $0x3b8] sm:$0xf0] }
  0xf3   :  { %2006 = vmatpush.bf16.msra.mxu1 %v3154_v47  ;;  %1979 = vmatpush.bf16.msrb.mxu3 %v3390_v1 }
  0xf5   :  { %2046 = vmatpush.bf16.msrb.mxu0 %v3062_v20  ;;  %v1012_v53 = vpop.f32.mrf.mxu2  ;;  %v986_v3 = vpop.f32.mrf.mxu0 }
  0xf6   :  { %v1026_v61 = vpop.f32.mrf.mxu3  ;;  %v1013_v2 = vadd.f32 %v1012_v53, %v999_v55  ;;  %1955 = vmatmul.bf16.vlgmr.msrb.gmra.mxu1 %v4083_v14  ;;  %v987_v6 = vadd.f32 %v986_v3, %v217_v30  ;;  %v1000_v7 = vpop.f32.mrf.mxu1  ;;  %v3203_v30 = vld [vmem:[#allocation4 + $0x1f8] sm:$0xf0]  ;;  %v3764_v3 = vld [vmem:[#allocation4 + $0x16c] sm:$0xf] }
  0xf7   :  { %2007 = vmatpush.bf16.msra.mxu1 %v3138_v54  ;;  %1980 = vmatpush.bf16.msrb.mxu3 %v3374_v16  ;;  %v3171_v55 = vld [vmem:[#allocation4 + $0x1b8] sm:$0xf0]  ;;  %v3249_v16 = vld [vmem:[#allocation4 + $0x248] sm:$0xf] }
  0xf8   :  { %v1001_v15 = vadd.f32 %v1000_v7, %v987_v6  ;;  %v1027_v17 = vadd.f32 %v1026_v61, %v1013_v2  ;;  %v3174_v53 = vor.u32 %v3772_v51, %v3171_v55  ;;  %v3282_v2 = vor.u32 %v3802_v63, %v3281_v62  ;;  %v3265_v6 = vld [vmem:[#allocation4 + $0x268] sm:$0xf]  ;;  %v3798_v7 = vld [vmem:[#allocation4 + $0x274] sm:$0xf0]  ;;  %v3315_v51 = vld [vmem:[#allocation4 + $0x2d8] sm:$0xf0] }
  0xf9   :  { %2047 = vmatpush.bf16.msrb.mxu0 %v3046_v32  ;;  %v3358_v32 = vor.u32 %v3819_v23, %v3355_v24  ;;  %v3266_v10 = vor.u32 %v3798_v7, %v3265_v6  ;;  %v3233_v24 = vld [vmem:[#allocation4 + $0x228] sm:$0xf]  ;;  %v3267_v6 = vld [vmem:[#allocation4 + $0x278] sm:$0xf0] }
  0xfa   :  { %v1089_v33 = vmax.f32 %v1027_v17, 0.0  ;;  %v3794_v17 = vld [vmem:[#allocation4 + $0x254] sm:$0xf0]  ;;  %v3393_v7 = vld [vmem:[#allocation4 + $0x368] sm:$0xf] }
  0xfb   :  { %2008 = vmatpush.bf16.msra.mxu1 %v3122_v8  ;;  %1981 = vmatpush.bf16.msrb.mxu3 %v3358_v32  ;;  %v3752_v32 = vld [vmem:[#allocation4 + $0x10c] sm:$0xf] }
  0xfd   :  { %2048 = vmatpush.bf16.msrb.mxu0 %v3030_v42  ;;  %v1014_v20 = vpop.f32.mrf.mxu2  ;;  %v3206_v42 = vor.u32 %v3780_v29, %v3203_v30 }
  0xfe   :  { %v1015_v25 = vadd.f32 %v1014_v20, %v1001_v15  ;;  %v1028_v26 = vpop.f32.mrf.mxu3  ;;  %v3250_v20 = vor.u32 %v3794_v17, %v3249_v16  ;;  %v3788_v17 = vld [vmem:[#allocation4 + $0x22c] sm:$0xf] }
  0xff   :  { %2009 = vmatpush.bf16.msra.mxu1 %v3106_v21  ;;  %1982 = vmatpush.bf16.msrb.mxu3 %v3342_v49  ;;  %v3756_v21 = vld [vmem:[#allocation4 + $0x12c] sm:$0xf]  ;;  %v3334_v49 = vor.u32 %v3812_v39, %v3331_v40  ;;  %v3411_v40 = vld [vmem:[#allocation4 + $0x398] sm:$0xf0] }
 0x100   :  { %v1029_v34 = vadd.f32 %v1028_v26, %v1015_v25  ;;  %v3790_v25 = vld [vmem:[#allocation4 + $0x234] sm:$0xf0]  ;;  %v3110_v28 = vor.u32 %v3756_v21, %v3107_v22  ;;  %v3832_v39 = vld [vmem:[#allocation4 + $0x38c] sm:$0xf] }
 0x101   :  { %2049 = vmatpush.bf16.msrb.mxu0 %v3014_v52  ;;  %v3297_v52 = vld [vmem:[#allocation4 + $0x2a8] sm:$0xf]  ;;  %v3234_v30 = vor.u32 %v3790_v25, %v3233_v24  ;;  %v3219_v24 = vld [vmem:[#allocation4 + $0x218] sm:$0xf0] }
 0x102   :  { %v1093_v41 = vmax.f32 %v1029_v34, 0.0  ;;  %v3298_v54 = vor.u32 %v3806_v60, %v3297_v52  ;;  %v3441_v52 = vld [vmem:[#allocation4 + $0x3c8] sm:$0xf]  ;;  %v3842_v60 = vld [vmem:[#allocation4 + $0x3d4] sm:$0xf0] }
 0x103   :  { %2010 = vmatpush.bf16.msra.mxu1 %v3090_v38  ;;  %v3345_v25 = vld [vmem:[#allocation4 + $0x308] sm:$0xf] }
 0x104   :  { %v4089_v47 = vpack.c.bf16 %v1093_v41, %v1089_v33  ;;  %v3091_v33 = vld [vmem:[#allocation4 + $0x118] sm:$0xf0] }
 0x105   :  { %2050 = vmatpush.bf16.msrb.mxu0 %v2998_v4  ;;  %v3139_v4 = vld [vmem:[#allocation4 + $0x178] sm:$0xf0] }
 0x106   :  { %1913 = vmatmul.bf16.vlgmr.msra.gmra.mxu2 %v4089_v47  ;;  %2011 = vmatmul.bf16.vlgmr.msra.gmra.mxu1 %v4083_v14  ;;  %v3142_v8 = vor.u32 %v3764_v3, %v3139_v4  ;;  %v3834_v3 = vld [vmem:[#allocation4 + $0x394] sm:$0xf0] }
 0x107   :  { %2059 = vmatpush.bf16.msrb.mxu1 %v3206_v42  ;;  %2017 = vmatpush.bf16.msra.mxu2 %v3330_v43  ;;  %v3094_v42 = vor.u32 %v3752_v32, %v3091_v33  ;;  %v3457_v43 = vld [vmem:[#allocation4 + $0x3e8] sm:$0xf]  ;;  %v3840_v33 = vld [vmem:[#allocation4 + $0x3cc] sm:$0xf] }
 0x109   :  { %2051 = vmatpush.bf16.msrb.mxu0 %v2982_v18 }
 0x10b   :  { %2060 = vmatpush.bf16.msrb.mxu1 %v3190_v50  ;;  %2018 = vmatpush.bf16.msra.mxu2 %v3314_v0  ;;  %v3458_v50 = vor.u32 %v3846_v45, %v3457_v43  ;;  %v3808_v0 = vld [vmem:[#allocation4 + $0x2cc] sm:$0xf]  ;;  %v3395_v43 = vld [vmem:[#allocation4 + $0x378] sm:$0xf0] }
 0x10d   :  { %2052 = vmatpush.bf16.msrb.mxu0 %v2966_v35  ;;  %v1040_v61 = vpop.f32.mrf.mxu0 }
 0x10e   :  { %v1054_v1 = vpop.f32.mrf.mxu1  ;;  %v1041_v5 = vadd.f32 %v1040_v61, %v218_v58  ;;  %v3838_v61 = vld [vmem:[#allocation4 + $0x3b4] sm:$0xf0] }
 0x10f   :  { %2061 = vmatpush.bf16.msrb.mxu1 %v3174_v53  ;;  %2019 = vmatpush.bf16.msra.mxu2 %v3298_v54  ;;  %v3318_v53 = vor.u32 %v3808_v0, %v3315_v51  ;;  %v3442_v54 = vor.u32 %v3842_v60, %v3441_v52  ;;  %v3816_v0 = vld [vmem:[#allocation4 + $0x30c] sm:$0xf]  ;;  %v3347_v51 = vld [vmem:[#allocation4 + $0x318] sm:$0xf0] }
 0x110   :  { %2053 = vmatmul.bf16.vlgmr.msrb.gmra.mxu0 %v4078_v44  ;;  %v3158_v44 = vor.u32 %v3768_v56, %v3155_v57  ;;  %v1055_v12 = vadd.f32 %v1054_v1, %v1041_v5  ;;  %v3804_v56 = vld [vmem:[#allocation4 + $0x2ac] sm:$0xf]  ;;  %v3299_v57 = vld [vmem:[#allocation4 + $0x2b8] sm:$0xf0]  ;;  %v3350_v52 = vor.u32 %v3816_v0, %v3347_v51  ;;  %v3875_v0 = vld [vmem:[#allocation6 + $0xe0] sm:$0xff] }
 0x111   :  { %v3302_v62 = vor.u32 %v3804_v56, %v3299_v57  ;;  %v3283_v1 = vld [vmem:[#allocation4 + $0x298] sm:$0xf0]  ;;  %v3851_v56 = vld [vmem:[#allocation6 + $0x20] sm:$0xff] }
 0x112   :  { %v3854_v60 = vld [vmem:[#allocation6 + $0x38] sm:$0xff] }
 0x113   :  { %2062 = vmatpush.bf16.msrb.mxu1 %v3158_v44  ;;  %2020 = vmatpush.bf16.msra.mxu2 %v3282_v2  ;;  %v3800_v44 = vld [vmem:[#allocation4 + $0x28c] sm:$0xf]  ;;  %v3409_v2 = vld [vmem:[#allocation4 + $0x388] sm:$0xf]  ;;  %v3850_v57 = vld [vmem:[#allocation6 + $0x18] sm:$0xff] }
 0x114   :  { %v3286_v4 = vor.u32 %v3800_v44, %v3283_v1  ;;  %v3410_v5 = vor.u32 %v3834_v3, %v3409_v2  ;;  %2373 = vmatpush.bf16.msra.mxu0 %v3854_v60  ;;  %v3860_v44 = vld [vmem:[#allocation6 + $0x68] sm:$0xff]  ;;  %v3859_v1 = vld [vmem:[#allocation6 + $0x60] sm:$0xff]  ;;  %v3858_v3 = vld [vmem:[#allocation6 + $0x58] sm:$0xff] }
 0x115   :  { %v1068_v9 = vpop.f32.mrf.mxu2  ;;  %v1042_v15 = vpop.f32.mrf.mxu0 }
 0x116   :  { %v1082_v13 = vpop.f32.mrf.mxu3  ;;  %v1043_v18 = vadd.f32 %v1042_v15, %v218_v58  ;;  %1969 = vmatmul.bf16.vlgmr.msrb.gmra.mxu2 %v4089_v47  ;;  %v1069_v23 = vadd.f32 %v1068_v9, %v1055_v12  ;;  %v1056_v26 = vpop.f32.mrf.mxu1  ;;  %v3425_v58 = vld [vmem:[#allocation4 + $0x3a8] sm:$0xf]  ;;  %v3254_v15 = vor.u32 %v3792_v11, %v3251_v31  ;;  %v4108_v11 = vld [vmem:[%s4124_s4] sm:$0xf] }
 0x117   :  { %2063 = vmatpush.bf16.msrb.mxu1 %v3142_v8  ;;  %2021 = vmatpush.bf16.msra.mxu2 %v3266_v10  ;;  %v3426_v63 = vor.u32 %v3838_v61, %v3425_v58  ;;  %v3830_v8 = vld [vmem:[#allocation4 + $0x374] sm:$0xf0]  ;;  %v3377_v12 = vld [vmem:[#allocation4 + $0x348] sm:$0xf]  ;;  %v3849_v61 = vld [vmem:[#allocation6 + $0x10] sm:$0xff] }
 0x118   :  { %v1057_v27 = vadd.f32 %v1056_v26, %v1043_v18  ;;  %v1083_v34 = vadd.f32 %v1082_v13, %v1069_v23  ;;  %v3394_v10 = vor.u32 %v3830_v8, %v3393_v7  ;;  %v3826_v13 = vld [vmem:[#allocation4 + $0x354] sm:$0xf0]  ;;  %v3235_v18 = vld [vmem:[#allocation4 + $0x238] sm:$0xf0]  ;;  %v3784_v23 = vld [vmem:[#allocation4 + $0x20c] sm:$0xf] }
 0x119   :  { %v3378_v16 = vor.u32 %v3826_v13, %v3377_v12  ;;  %v3238_v21 = vor.u32 %v3788_v17, %v3235_v18  ;;  %v3818_v26 = vld [vmem:[#allocation4 + $0x314] sm:$0xf0]  ;;  %v3869_v7 = vld [vmem:[#allocation6 + $0xb0] sm:$0xff]  ;;  %v3856_v8 = vld [vmem:[#allocation6 + $0x48] sm:$0xff] }
 0x11a   :  { %v1090_v59 = vmax.f32 %v1083_v34, 0.0  ;;  %v3443_v34 = vld [vmem:[#allocation4 + $0x3d8] sm:$0xf0]  ;;  %v3855_v12 = vld [vmem:[#allocation6 + $0x40] sm:$0xff] }
 0x11b   :  { %2064 = vmatpush.bf16.msrb.mxu1 %v3126_v19  ;;  %2022 = vmatpush.bf16.msra.mxu2 %v3250_v20  ;;  %v3361_v19 = vld [vmem:[#allocation4 + $0x328] sm:$0xf]  ;;  %v3822_v20 = vld [vmem:[#allocation4 + $0x334] sm:$0xf0]  ;;  %v3867_v13 = vld [vmem:[#allocation6 + $0xa0] sm:$0xff] }
 0x11c   :  { %v3362_v22 = vor.u32 %v3822_v20, %v3361_v19  ;;  %v3862_v58 = vld [vmem:[#allocation6 + $0x78] sm:$0xff] }
 0x11d   :  { %v1070_v29 = vpop.f32.mrf.mxu2  ;;  %v3866_v17 = vld [vmem:[#allocation6 + $0x98] sm:$0xff] }
 0x11e   :  { %v1071_v35 = vadd.f32 %v1070_v29, %v1057_v27  ;;  %v1084_v38 = vpop.f32.mrf.mxu3  ;;  %v3844_v27 = vld [vmem:[#allocation4 + $0x3ec] sm:$0xf]  ;;  %v3222_v29 = vor.u32 %v3784_v23, %v3219_v24  ;;  %v3865_v23 = vld [vmem:[#allocation6 + $0x90] sm:$0xff] }
 0x11f   :  { %2065 = vmatpush.bf16.msrb.mxu1 %v3110_v28  ;;  %2023 = vmatpush.bf16.msra.mxu2 %v3234_v30  ;;  %v3459_v28 = vld [vmem:[#allocation4 + $0x3f8] sm:$0xf0]  ;;  %v3346_v30 = vor.u32 %v3818_v26, %v3345_v25 }
 0x120   :  { %v1085_v41 = vadd.f32 %v1084_v38, %v1071_v35  ;;  %v3462_v32 = vor.u32 %v3844_v27, %v3459_v28  ;;  %v3446_v35 = vor.u32 %v3840_v33, %v3443_v34  ;;  %v3430_v38 = vor.u32 %v3836_v36, %v3427_v37  ;;  %v3863_v36 = vld [vmem:[#allocation6 + $0x80] sm:$0xff]  ;;  %v3878_v37 = vld [vmem:[#allocation6 + $0xf8] sm:$0xff] }
 0x122   :  { %v1094_v48 = vmax.f32 %v1085_v41, 0.0  ;;  %v3414_v41 = vor.u32 %v3832_v39, %v3411_v40  ;;  %v1230_v39 = vperm.slane %v4108_v11, 1 }
 0x123   :  { %2066 = vmatpush.bf16.msrb.mxu1 %v3094_v42  ;;  %2024 = vmatpush.bf16.msra.mxu2 %v3218_v46  ;;  %v3828_v42 = vld [vmem:[#allocation4 + $0x36c] sm:$0xf] }
 0x124   :  { %v4096_v55 = vpack.c.bf16 %v1094_v48, %v1090_v59  ;;  %v3398_v45 = vor.u32 %v3828_v42, %v3395_v43  ;;  %v3824_v46 = vld [vmem:[#allocation4 + $0x34c] sm:$0xf]  ;;  %v3379_v59 = vld [vmem:[#allocation4 + $0x358] sm:$0xf0]  ;;  %v3877_v42 = vld [vmem:[#allocation6 + $0xf0] sm:$0xff] }
 0x125   :  { %v3382_v48 = vor.u32 %v3824_v46, %v3379_v59  ;;  %v3876_v59 = vld [vmem:[#allocation6 + $0xe8] sm:$0xff] }
 0x126   :  { %1927 = vmatmul.bf16.vlgmr.msra.gmra.mxu3 %v4096_v55  ;;  %2067 = vmatmul.bf16.vlgmr.msrb.gmra.mxu1 %v4083_v14  ;;  %v3796_v14 = vld [vmem:[#allocation4 + $0x26c] sm:$0xf] }
 0x127   :  { %2073 = vmatpush.bf16.msrb.mxu2 %v3334_v49  ;;  %2031 = vmatpush.bf16.msra.mxu3 %v3458_v50  ;;  %v3270_v9 = vor.u32 %v3796_v14, %v3267_v6  ;;  %v3820_v49 = vld [vmem:[#allocation4 + $0x32c] sm:$0xf]  ;;  %v3857_v6 = vld [vmem:[#allocation6 + $0x50] sm:$0xff] }
 0x128   :  { %2025 = vmatmul.bf16.vlgmr.msra.gmra.mxu2 %v4089_v47  ;;  %2387 = vmatpush.bf16.msra.mxu1 %v3862_v58 }
 0x12b   :  { %2074 = vmatpush.bf16.msrb.mxu2 %v3318_v53  ;;  %2032 = vmatpush.bf16.msra.mxu3 %v3442_v54  ;;  %v3853_v53 = vld [vmem:[#allocation6 + $0x30] sm:$0xff]  ;;  %v3852_v54 = vld [vmem:[#allocation6 + $0x28] sm:$0xff] }
 0x12c   :  { %2374 = vmatpush.bf16.msra.mxu0 %v3853_v53 }
 0x12f   :  { %2075 = vmatpush.bf16.msrb.mxu2 %v3302_v62  ;;  %2033 = vmatpush.bf16.msra.mxu3 %v3426_v63  ;;  %v3861_v62 = vld [vmem:[#allocation6 + $0x70] sm:$0xff]  ;;  %v3848_v63 = vld [vmem:[#allocation6 + $0x8] sm:$0xff] }
 0x130   :  { %2375 = vmatpush.bf16.msra.mxu0 %v3852_v54  ;;  %2388 = vmatpush.bf16.msra.mxu1 %v3861_v62  ;;  %v3874_v62 = vld [vmem:[#allocation6 + $0xd8] sm:$0xff] }
 0x133   :  { %2076 = vmatpush.bf16.msrb.mxu2 %v3286_v4  ;;  %2034 = vmatpush.bf16.msra.mxu3 %v3410_v5  ;;  %v3870_v4 = vld [vmem:[#allocation6 + $0xb8] sm:$0xff] }
 0x134   :  { %2376 = vmatpush.bf16.msra.mxu0 %v3851_v56  ;;  %2389 = vmatpush.bf16.msra.mxu1 %v3860_v44 }
 0x136   :  { %1983 = vmatmul.bf16.vlgmr.msrb.gmra.mxu3 %v4096_v55 }
 0x137   :  { %2077 = vmatpush.bf16.msrb.mxu2 %v3270_v9  ;;  %2035 = vmatpush.bf16.msra.mxu3 %v3394_v10  ;;  %v3868_v9 = vld [vmem:[#allocation6 + $0xa8] sm:$0xff] }
 0x138   :  { %2377 = vmatpush.bf16.msra.mxu0 %v3850_v57  ;;  %2390 = vmatpush.bf16.msra.mxu1 %v3859_v1 }
 0x13b   :  { %2078 = vmatpush.bf16.msrb.mxu2 %v3254_v15  ;;  %2036 = vmatpush.bf16.msra.mxu3 %v3378_v16  ;;  %v1229_v16 = vperm.slane %v4108_v11, 0 }
 0x13c   :  { %2378 = vmatpush.bf16.msra.mxu0 %v3849_v61  ;;  %2391 = vmatpush.bf16.msra.mxu1 %v3858_v3 }
 0x13f   :  { %2079 = vmatpush.bf16.msrb.mxu2 %v3238_v21  ;;  %2037 = vmatpush.bf16.msra.mxu3 %v3362_v22 }
 0x140   :  { %2379 = vmatpush.bf16.msra.mxu0 %v3848_v63  ;;  %2392 = vmatpush.bf16.msra.mxu1 %v3857_v6  ;;  %v1231_v63 = vperm.slane %v4108_v11, 2  ;;  %v3872_v6 = vld [vmem:[#allocation6 + $0xc8] sm:$0xff] }
 0x143   :  { %2080 = vmatpush.bf16.msrb.mxu2 %v3222_v29  ;;  %2038 = vmatpush.bf16.msra.mxu3 %v3346_v30  ;;  %v3864_v30 = vld [vmem:[#allocation6 + $0x88] sm:$0xff] }
 0x144   :  { %v1886_v2 = vpop.f32.mrf.mxu0  ;;  %2393 = vmatpush.bf16.msra.mxu1 %v3856_v8 }
 0x145   :  { %v1887_v19 = vadd.f32 %v1886_v2, %v1229_v16 }
 0x146   :  { %2081 = vmatmul.bf16.vlgmr.msrb.gmra.mxu2 %v4089_v47  ;;  %2039 = vmatmul.bf16.vlgmr.msra.gmra.mxu3 %v4096_v55  ;;  %v3363_v47 = vld [vmem:[#allocation4 + $0x338] sm:$0xf0] }
 0x147   :  { %2087 = vmatpush.bf16.msrb.mxu3 %v3462_v32  ;;  %v3366_v50 = vor.u32 %v3820_v49, %v3363_v47  ;;  %2401 = vmatpush.bf16.msra.mxu2 %v3870_v4 }
 0x148   :  { %2394 = vmatpush.bf16.msra.mxu1 %v3855_v12  ;;  %v3871_v12 = vld [vmem:[#allocation6 + $0xc0] sm:$0xff] }
 0x14b   :  { %2088 = vmatpush.bf16.msrb.mxu3 %v3446_v35  ;;  %2402 = vmatpush.bf16.msra.mxu2 %v3869_v7 }
 0x14c   :  { %v1888_v10 = vpop.f32.mrf.mxu0 }
 0x14d   :  { %v1889_v21 = vadd.f32 %v1888_v10, %v1229_v16 }
 0x14f   :  { %2089 = vmatpush.bf16.msrb.mxu3 %v3430_v38  ;;  %2403 = vmatpush.bf16.msra.mxu2 %v3868_v9 }
 0x153   :  { %2090 = vmatpush.bf16.msrb.mxu3 %v3414_v41  ;;  %2404 = vmatpush.bf16.msra.mxu2 %v3867_v13 }
 0x154   :  { %v1942_v20 = vpop.f32.mrf.mxu0 }
 0x155   :  { %v1943_v46 = vadd.f32 %v1942_v20, %v1230_v39 }
 0x157   :  { %2091 = vmatpush.bf16.msrb.mxu3 %v3398_v45  ;;  %2405 = vmatpush.bf16.msra.mxu2 %v3866_v17 }
 0x15b   :  { %2092 = vmatpush.bf16.msrb.mxu3 %v3382_v48  ;;  %2406 = vmatpush.bf16.msra.mxu2 %v3865_v23 }
 0x15c   :  { %v1944_v38 = vpop.f32.mrf.mxu0 }
 0x15d   :  { %v1945_v48 = vadd.f32 %v1944_v38, %v1230_v39 }
 0x15f   :  { %2093 = vmatpush.bf16.msrb.mxu3 %v3366_v50  ;;  %2407 = vmatpush.bf16.msra.mxu2 %v3864_v30 }
 0x163   :  { %2094 = vmatpush.bf16.msrb.mxu3 %v3350_v52  ;;  %v1900_v5 = vpop.f32.mrf.mxu1  ;;  %2408 = vmatpush.bf16.msra.mxu2 %v3863_v36 }
 0x164   :  { %v1901_v22 = vadd.f32 %v1900_v5, %v1887_v19 }
 0x166   :  { %2095 = vmatmul.bf16.vlgmr.msrb.gmra.mxu3 %v4096_v55  ;;  %v3847_v55 = vld [vmem:[#allocation6] sm:$0xff] }
 0x167   :  { %2380 = vmatpush.bf16.msra.mxu0 %v3847_v55  ;;  %2415 = vmatpush.bf16.msra.mxu3 %v3878_v37  ;;  %v3873_v55 = vld [vmem:[#allocation6 + $0xd0] sm:$0xff] }
 0x16b   :  { %v1902_v31 = vpop.f32.mrf.mxu1  ;;  %2416 = vmatpush.bf16.msra.mxu3 %v3877_v42  ;;  %v3891_v42 = vld [vmem:[%s4126_s6] ss:$0 sm:$0xff] }
 0x16c   :  { %v1903_v25 = vadd.f32 %v1902_v31, %v1889_v21 }
 0x16d   :  { %v1998_v51 = vpop.f32.mrf.mxu0 }
 0x16e   :  { %v1999_v3 = vadd.f32 %v1998_v51, %v1231_v63 }
 0x16f   :  { %2417 = vmatpush.bf16.msra.mxu3 %v3876_v59 }
 0x173   :  { %v1956_v24 = vpop.f32.mrf.mxu1  ;;  %2418 = vmatpush.bf16.msra.mxu3 %v3875_v0 }
 0x174   :  { %v1957_v49 = vadd.f32 %v1956_v24, %v1943_v46 }
 0x175   :  { %v2000_v1 = vpop.f32.mrf.mxu0 }
 0x176   :  { %v2001_v5 = vadd.f32 %v2000_v1, %v1231_v63 }
 0x177   :  { %2419 = vmatpush.bf16.msra.mxu3 %v3874_v62 }
 0x17b   :  { %v1958_v41 = vpop.f32.mrf.mxu1  ;;  %2420 = vmatpush.bf16.msra.mxu3 %v3873_v55 }
 0x17c   :  { %v1959_v47 = vadd.f32 %v1958_v41, %v1945_v48 }
 0x17f   :  { %2421 = vmatpush.bf16.msra.mxu3 %v3872_v6 }
 0x183   :  { %v2012_v53 = vpop.f32.mrf.mxu1  ;;  %2422 = vmatpush.bf16.msra.mxu3 %v3871_v12 }
 0x189   :  { %v1914_v14 = vpop.f32.mrf.mxu2 }
 0x18a   :  { %v1915_v26 = vadd.f32 %v1914_v14, %v1901_v22  ;;  %v2013_v14 = vadd.f32 %v2012_v53, %v1999_v3  ;;  %v1232_v22 = vperm.slane %v4108_v11, 3 }
 0x18b   :  { %v2014_v4 = vpop.f32.mrf.mxu1 }
 0x18c   :  { %v2015_v8 = vadd.f32 %v2014_v4, %v2001_v5 }
 0x18d   :  { %v2054_v19 = vpop.f32.mrf.mxu0 }
 0x191   :  { %v1916_v15 = vpop.f32.mrf.mxu2 }
 0x192   :  { %v1917_v28 = vadd.f32 %v1916_v15, %v1903_v25  ;;  %v2055_v25 = vadd.f32 %v2054_v19, %v1232_v22 }
 0x195   :  { %v2056_v23 = vpop.f32.mrf.mxu0 }
 0x199   :  { %v1970_v27 = vpop.f32.mrf.mxu2 }
 0x19a   :  { %v1971_v50 = vadd.f32 %v1970_v27, %v1957_v49  ;;  %v2057_v27 = vadd.f32 %v2056_v23, %v1232_v22 }
 0x1a1   :  { %v1972_v43 = vpop.f32.mrf.mxu2 }
 0x1a2   :  { %v1973_v52 = vadd.f32 %v1972_v43, %v1959_v47 }
 0x1a3   :  { %v2068_v20 = vpop.f32.mrf.mxu1 }
 0x1a9   :  { %v1928_v18 = vpop.f32.mrf.mxu3 }
 0x1aa   :  { %v1929_v29 = vadd.f32 %v1928_v18, %v1915_v26 }
 0x1ab   :  { %v2026_v57 = vpop.f32.mrf.mxu2  ;;  %v2070_v26 = vpop.f32.mrf.mxu1 }
 0x1ac   :  { %v2101_v34 = vmax.f32 %v1929_v29, 0.0  ;;  %v2027_v9 = vadd.f32 %v2026_v57, %v2013_v14  ;;  %v2071_v30 = vadd.f32 %v2070_v26, %v2057_v27 }
 0x1b1   :  { %v1930_v32 = vpop.f32.mrf.mxu3 }
 0x1b2   :  { %v1931_v33 = vadd.f32 %v1930_v32, %v1917_v28  ;;  %v2069_v28 = vadd.f32 %v2068_v20, %v2055_v25 }
 0x1b3   :  { %v2028_v7 = vpop.f32.mrf.mxu2 }
 0x1b4   :  { %v2105_v35 = vmax.f32 %v1931_v33, 0.0  ;;  %v2029_v10 = vadd.f32 %v2028_v7, %v2015_v8 }
 0x1b6   :  { %v2109_v40 = vpack.c.bf16 %v2105_v35, %v2101_v34 }
 0x1b8   :  { %2381 = vmatmul.bf16.vlgmr.msra.gmra.mxu0 %v2109_v40 }
 0x1b9   :  { %v1984_v45 = vpop.f32.mrf.mxu3 }
 0x1ba   :  { %v1985_v60 = vadd.f32 %v1984_v45, %v1971_v50 }
 0x1bc   :  { %v2102_v58 = vmax.f32 %v1985_v60, 0.0 }
 0x1c1   :  { %v1986_v54 = vpop.f32.mrf.mxu3 }
 0x1c2   :  { %v1987_v56 = vadd.f32 %v1986_v54, %v1973_v52 }
 0x1c4   :  { %v2106_v61 = vmax.f32 %v1987_v56, 0.0 }
 0x1c6   :  { %v2110_v44 = vpack.c.bf16 %v2106_v61, %v2102_v58 }
 0x1c8   :  { %2395 = vmatmul.bf16.vlgmr.msra.gmra.mxu1 %v2110_v44 }
 0x1c9   :  { %v2040_v2 = vpop.f32.mrf.mxu3  ;;  %v2082_v21 = vpop.f32.mrf.mxu2 }
 0x1ca   :  { %v2041_v31 = vadd.f32 %v2040_v2, %v2027_v9  ;;  %v2083_v32 = vadd.f32 %v2082_v21, %v2069_v28 }
 0x1cc   :  { %v2103_v16 = vmax.f32 %v2041_v31, 0.0 }
 0x1d1   :  { %v2042_v13 = vpop.f32.mrf.mxu3  ;;  %v2084_v29 = vpop.f32.mrf.mxu2 }
 0x1d2   :  { %v2043_v15 = vadd.f32 %v2042_v13, %v2029_v10  ;;  %v2085_v33 = vadd.f32 %v2084_v29, %v2071_v30 }
 0x1d4   :  { %v2107_v17 = vmax.f32 %v2043_v15, 0.0 }
 0x1d6   :  { %v2111_v18 = vpack.c.bf16 %v2107_v17, %v2103_v16 }
 0x1d8   :  { %2409 = vmatmul.bf16.vlgmr.msra.gmra.mxu2 %v2111_v18 }
 0x1e9   :  { %v2096_v24 = vpop.f32.mrf.mxu3 }
 0x1ea   :  { %v2097_v34 = vadd.f32 %v2096_v24, %v2083_v32 }
 0x1ec   :  { %v2104_v37 = vmax.f32 %v2097_v34, 0.0 }
 0x1f1   :  { %v2098_v35 = vpop.f32.mrf.mxu3 }
 0x1f2   :  { %v2099_v36 = vadd.f32 %v2098_v35, %v2085_v33 }
 0x1f4   :  { %v2108_v38 = vmax.f32 %v2099_v36, 0.0 }
 0x1f6   :  { %v2112_v39 = vpack.c.bf16 %v2108_v38, %v2104_v37 }
 0x1f8   :  { %2423 = vmatmul.bf16.vlgmr.msra.gmra.mxu3 %v2112_v39 }
 0x235   :  { %v2382_v40 = vpop.f32.mrf.mxu0 }
 0x236   :  { %v2383_v59 = vadd.f32 %v3891_v42, %v2382_v40 }
 0x23d   :  { %v2384_v43 = vpop.f32.mrf.mxu0 }
 0x23e   :  { %v2385_v48 = vadd.f32 %v3891_v42, %v2384_v43 }
 0x245   :  { %v2396_v41 = vpop.f32.mrf.mxu1 }
 0x246   :  { %v2397_v47 = vadd.f32 %v2396_v41, %v2383_v59 }
 0x24d   :  { %v2398_v46 = vpop.f32.mrf.mxu1 }
 0x24e   :  { %v2399_v50 = vadd.f32 %v2398_v46, %v2385_v48 }
 0x25b   :  { %v2410_v11 = vpop.f32.mrf.mxu2 }
 0x25c   :  { %v2411_v0 = vadd.f32 %v2410_v11, %v2397_v47 }
 0x263   :  { %v2412_v49 = vpop.f32.mrf.mxu2 }
 0x264   :  { %v2413_v51 = vadd.f32 %v2412_v49, %v2399_v50 }
 0x27b   :  { %v2424_v45 = vpop.f32.mrf.mxu3 }
 0x27c   :  { %v2425_v60 = vadd.f32 %v2424_v45, %v2411_v0 }
 0x283   :  { %v2426_v52 = vpop.f32.mrf.mxu3 }
 0x284   :  { %v2427_v53 = vadd.f32 %v2426_v52, %v2413_v51 }
 0x286   :  { %v3882_v54 = vpack.c.bf16 %v2427_v53, %v2425_v60 }
 0x288   :  { %3883 = vst [vmem:[%s4127_s7] sm:$0xff] %v3882_v54  }
 0x289   :  { %2437 = vsyncpa [#allocation3], 1 }
 0x28a   :  { %2438 = vsyncpa [#allocation5], 1 }

</bundles_post_ra>
